<compile_context>
chip_gen: v7x
topology: tpu7x:2x2x1
jax: 0.10.0
libtpu: 0.0.40
codegen_flags: <defaults>
</compile_context>

<pallas_src>
import functools

import jax
import jax.numpy as jnp
from jax.experimental import pallas as pl
from jax.experimental.pallas import tpu as pltpu


def _round_up(n, m):
    return ((n + m - 1) // m) * m


def _pad_last(a, width):
    pad = width - a.shape[-1]
    if pad <= 0:
        return a
    cfg = [(0, 0)] * (a.ndim - 1) + [(0, pad)]
    return jnp.pad(a, cfg)


def _vmem_capacity_bytes():
    try:
        return int(pltpu.get_tpu_info().vmem_capacity_bytes)
    except Exception:
        return 64 * 1024 * 1024  # conservative (v7x-sized) fallback


def _pick_batch_tile(batch, n_vars, k_past, seq_len, h_pad, vmem_bytes):
    """Generation-aware batch tile: fits VMEM, prefers >=4 tiles (>=2 for v7x megacore)."""
    b8 = _round_up(batch, 8)
    # rough per-sample footprint: bf16 inputs (double buffered) + f32 activations
    per_sample = 2 * 2 * (k_past + 1) * n_vars * seq_len
    per_sample += 4 * 4 * (k_past + 1) * n_vars * h_pad
    per_sample += 4 * 4 * n_vars * h_pad
    weights = 2 * 2 * (seq_len * h_pad + h_pad * h_pad) + 8 * 4 * h_pad
    budget = max(vmem_bytes // 3 - weights, 2 * 1024 * 1024)
    target_tiles = 4 if b8 >= 32 else (2 if b8 >= 16 else 1)
    for tb in (512, 256, 128, 64, 32, 16, 8):
        if tb > b8:
            continue
        if tb > 8 and tb * per_sample > budget:
            continue
        if tb > 8 and pl.cdiv(b8, tb) < target_tiles:
            continue
        return tb
    return 8


# --------------------------------------------------------------------------- #
# Pallas kernel: one batch tile (TB samples) per grid step.                    #
# --------------------------------------------------------------------------- #
def _tct_kernel(x_ref, p_ref, w_fe_ref, b_fe_ref, attn_w_ref,
                w1_ref, b1_ref, gamma_ref, beta_ref,
                w_head_ref, w2h_ref, b_fused_ref, out_ref,
                *, k_past, n_vars, batch_tile, hidden_true):
    K, V, TB = k_past, n_vars, batch_tile
    Hp = w_fe_ref.shape[1]
    f32 = jnp.float32

    # ---- backbone: shared Linear(seq -> hidden); (batch, frame, var) folded into rows.
    #      bf16 MXU operands, f32 accumulation; downstream math stays in f32.
    w_fe = w_fe_ref[...]                                           # (S, Hp) bf16
    b_fe = b_fe_ref[...]                                           # (1, Hp) f32
    lx2 = jnp.dot(x_ref[...], w_fe, preferred_element_type=f32) + b_fe   # (TB*V, Hp)
    lp2 = jnp.dot(p_ref[...], w_fe, preferred_element_type=f32) + b_fe   # (TB*K*V, Hp)
    lx = lx2.reshape(TB, 1, V, Hp)      # temporal slot 0 (= x)
    lp = lp2.reshape(TB, K, V, Hp)      # temporal slots 1..K (= past)

    # torch semantics: logits = cat([x, past]); x_logits = logits[:, -1]
    # (= backbone(past[:, -1])); pool over logits[:, :-1] = {x, past[0..K-2]}.
    x_logits = lp[:, K - 1]                                        # (TB, V, Hp)

    # ---- AttentionPool over the temporal axis (no concat / slice copies) ----
    aw = attn_w_ref[...][None, None]                               # (1, 1, V, Hp)
    s_x = jnp.sum(lx * aw, axis=-1)                                # (TB, 1, V)
    s_p = jnp.sum(lp * aw, axis=-1)                                # (TB, K, V)
    in_pool = jax.lax.broadcasted_iota(jnp.int32, (TB, K, V), 1) < (K - 1)
    m = jnp.maximum(
        jnp.max(jnp.where(in_pool, s_p, -jnp.inf), axis=1, keepdims=True), s_x)
    e_x = jnp.exp(s_x - m)                                         # (TB, 1, V)
    e_p = jnp.where(in_pool, jnp.exp(s_p - m), 0.0)                # (TB, K, V)
    denom = e_x + jnp.sum(e_p, axis=1, keepdims=True)              # (TB, 1, V)
    num = e_x[..., None] * lx + jnp.sum(e_p[..., None] * lp, axis=1, keepdims=True)
    pooled = (num * (1.0 / denom)[..., None])[:, 0]                # (TB, V, Hp)

    # ---- change_detect: Linear -> ReLU -> LayerNorm (one-pass stats over true H) ----
    d2 = jnp.abs(x_logits - pooled).reshape(TB * V, Hp)            # padded cols == 0
    h = jnp.dot(d2.astype(jnp.bfloat16), w1_ref[...], preferred_element_type=f32)
    h = jnp.maximum(h + b1_ref[...], 0.0)                          # (TB*V, Hp), padded cols == 0
    inv_h = 1.0 / hidden_true
    mu = jnp.sum(h, axis=-1, keepdims=True) * inv_h
    ms = jnp.sum(h * h, axis=-1, keepdims=True) * inv_h
    var = ms - mu * mu
    hn = (h - mu) * jax.lax.rsqrt(var + 1e-5) * gamma_ref[...] + beta_ref[...]

    # ---- head folded with change_detect's 2nd Linear (inference identity):
    #      out = mean_V(x_logits)@w_head^T + mean_V(hn)@(w2@w_head^T) + const
    xbar = jnp.mean(x_logits, axis=1)                              # (TB, Hp)
    hbar = jnp.mean(hn.reshape(TB, V, Hp), axis=1)                 # (TB, Hp)
    dn = (((1,), (1,)), ((), ()))
    out_row = (jax.lax.dot_general(w_head_ref[...], xbar, dn, preferred_element_type=f32)
               + jax.lax.dot_general(w2h_ref[...], hbar, dn, preferred_element_type=f32)
               + b_fused_ref[0])                                   # (1, TB) lane-dense
    out_ref[...] = out_row.reshape(1, 1, TB)


# --------------------------------------------------------------------------- #
# Wrapper                                                                      #
# --------------------------------------------------------------------------- #
def tct_forward(x, past, params, *, batch_tile=None):
    B, V, S = x.shape
    K = past.shape[1]
    H = params["w_fe"].shape[1]
    Hp = _round_up(H, 128)
    bf16, f32 = jnp.bfloat16, jnp.float32

    vmem = _vmem_capacity_bytes()
    TB = batch_tile if batch_tile is not None else _pick_batch_tile(B, V, K, S, Hp, vmem)
    B_pad = _round_up(B, TB)
    if B_pad != B:
        x = jnp.pad(x, ((0, B_pad - B), (0, 0), (0, 0)))
        past = jnp.pad(past, ((0, B_pad - B), (0, 0), (0, 0), (0, 0)))
    n_tiles = B_pad // TB

    # Row-major reshapes are free; bf16 halves the dominant HBM traffic.
    x2 = x.astype(bf16).reshape(B_pad * V, S)
    p2 = past.astype(bf16).reshape(B_pad * K * V, S)

    # Zero-pad the hidden dim to a lane multiple (128).  Padded columns stay
    # exactly zero through the whole kernel (weights/biases/gamma/beta padded
    # with zeros; LayerNorm statistics divide by the true H).
    w_fe = _pad_last(params["w_fe"], Hp).astype(bf16)
    b_fe = _pad_last(params["b_fe"], Hp)
    attn_w = _pad_last(params["attn_w"], Hp)
    w1 = jnp.pad(params["w1"], ((0, Hp - H), (0, Hp - H))).astype(bf16)
    b1 = _pad_last(params["b1"], Hp)
    gamma = _pad_last(params["gamma"], Hp)
    beta = _pad_last(params["beta"], Hp)
    w_head = _pad_last(params["w_head"], Hp)
    # head folded into change_detect's second Linear (inference-only rewrite):
    w2h = _pad_last(params["w_head"] @ params["w2"].T, Hp)                     # (1, Hp)
    b_fused = (jnp.sum(params["b2"] * params["w_head"]) + params["b_head"][0]).reshape(1)

    kernel = functools.partial(_tct_kernel, k_past=K, n_vars=V,
                               batch_tile=TB, hidden_true=H)
    full = lambda shp: pl.BlockSpec(shp, lambda i: (0,) * len(shp))

    flops = (2 * B_pad * (K + 1) * V * S * Hp + 2 * B_pad * V * Hp * Hp
             + 4 * B_pad * Hp + 12 * B_pad * (K + 1) * V * Hp)
    transcendentals = B_pad * V * (K + 3)
    bytes_accessed = (2 * (x2.size + p2.size) + 4 * B_pad
                      + 2 * (w_fe.size + w1.size)
                      + 4 * (b_fe.size + attn_w.size + b1.size + gamma.size
                             + beta.size + w_head.size + w2h.size + 1))

    out = pl.pallas_call(
        kernel,
        out_shape=jax.ShapeDtypeStruct((n_tiles, 1, TB), f32),
        grid=(n_tiles,),
        in_specs=[
            pl.BlockSpec((TB * V, S), lambda i: (i, 0)),          # x rows (bf16)
            pl.BlockSpec((TB * K * V, S), lambda i: (i, 0)),      # past rows (bf16)
            full((S, Hp)),                                        # w_fe (bf16)
            full((1, Hp)),                                        # b_fe
            full((V, Hp)),                                        # attn_w
            full((Hp, Hp)),                                       # w1 (bf16)
            full((1, Hp)),                                        # b1
            full((1, Hp)),                                        # gamma
            full((1, Hp)),                                        # beta
            full((1, Hp)),                                        # w_head
            full((1, Hp)),                                        # w_head @ w2^T (folded head)
            pl.BlockSpec(memory_space=pltpu.MemorySpace.SMEM),    # fused bias scalar
        ],
        out_specs=pl.BlockSpec((1, 1, TB), lambda i: (i, 0, 0)),  # batch on lane axis
        compiler_params=pltpu.CompilerParams(
            dimension_semantics=("parallel",),
            vmem_limit_bytes=int(min(max(vmem // 2, 32 * 1024 * 1024),
                                     100 * 1024 * 1024)),
        ),
        cost_estimate=pl.CostEstimate(
            flops=int(flops),
            transcendentals=int(transcendentals),
            bytes_accessed=int(bytes_accessed),
        ),
    )(x2, p2, w_fe, b_fe, attn_w, w1, b1, gamma, beta, w_head, w2h, b_fused)

    return {"logits": out.reshape(B_pad, 1)[:B]}


# --------------------------------------------------------------------------- #
# Pure-JAX reference (same math, same bf16-MXU / f32-elementwise dtype policy)  #
# --------------------------------------------------------------------------- #
def tct_reference(x, past, p):
    bf16, f32 = jnp.bfloat16, jnp.float32
    z = jnp.concatenate([x[:, None], past], axis=1)                       # (B,K+1,V,S)
    logits = jnp.einsum("bkvs,sh->bkvh", z.astype(bf16), p["w_fe"].astype(bf16),
                        preferred_element_type=f32) + p["b_fe"]           # (B,K+1,V,H)
    x_logits = logits[:, -1]
    past_logits = logits[:, :-1]
    scores = jnp.einsum("bkvh,vh->bkv", past_logits, p["attn_w"])
    a = jax.nn.softmax(scores, axis=1)
    pooled = jnp.einsum("bkv,bkvh->bvh", a, past_logits)
    d = jnp.abs(x_logits - pooled)
    h = jax.nn.relu(jnp.einsum("bvh,hj->bvj", d.astype(bf16), p["w1"].astype(bf16),
                               preferred_element_type=f32) + p["b1"])
    mu = h.mean(-1, keepdims=True)
    var = ((h - mu) ** 2).mean(-1, keepdims=True)
    hn = (h - mu) / jnp.sqrt(var + 1e-5) * p["gamma"] + p["beta"]
    change = hn @ p["w2"] + p["b2"]
    feat = (x_logits + change).mean(1)                                    # (B,H)
    return feat @ p["w_head"].T + p["b_head"]                             # (B,1)


# --------------------------------------------------------------------------- #
def make_params(key, n_vars, hidden_dim, seq_len):
    ks = jax.random.split(key, 12)
    f32 = jnp.float32
    scale = 0.1
    return {
        "w_fe":   scale * jax.random.normal(ks[0], (seq_len, hidden_dim), f32),
        "b_fe":   scale * jax.random.normal(ks[1], (1, hidden_dim), f32),
        "attn_w": scale * jax.random.normal(ks[2], (n_vars, hidden_dim), f32),
        "w1":     scale * jax.random.normal(ks[3], (hidden_dim, hidden_dim), f32),
        "b1":     scale * jax.random.normal(ks[4], (1, hidden_dim), f32),
        "gamma":  jnp.ones((1, hidden_dim), f32),
        "beta":   jnp.zeros((1, hidden_dim), f32),
        "w2":     scale * jax.random.normal(ks[5], (hidden_dim, hidden_dim), f32),
        "b2":     scale * jax.random.normal(ks[6], (1, hidden_dim), f32),
        "w_head": scale * jax.random.normal(ks[7], (1, hidden_dim), f32),
        "b_head": scale * jax.random.normal(ks[8], (1,), f32),
    }


if __name__ == "__main__":
    B, V, H, K, S = 2, 4, 32, 3, 16

    key = jax.random.PRNGKey(0)
    kx, kp, kw = jax.random.split(key, 3)
    x = jax.random.normal(kx, (B, V, S), jnp.float32)
    past = jax.random.normal(kp, (B, K, V, S), jnp.float32)
    params = make_params(kw, V, H, S)

    out = tct_forward(x, past, params)["logits"]
    out = jax.block_until_ready(out)

    ref = tct_reference(x, past, params)
    assert out.shape == (B, 1), out.shape
    # tolerance covers bf16 MXU operands + the (mathematically exact) head fold
    assert bool(jnp.allclose(out, ref, rtol=2e-2, atol=2e-2)), (out, ref)

    print("KERNEL_OK")
</pallas_src>

<mosaic_0001>
module attributes {stable_mosaic.version = 11 : i64} {
  func.func @_tct_kernel(%arg0: i32, %arg1: memref<32x16xbf16, #tpu.memory_space<vmem>>, %arg2: memref<96x16xbf16, #tpu.memory_space<vmem>>, %arg3: memref<16x128xbf16, #tpu.memory_space<vmem>>, %arg4: memref<1x128xf32, #tpu.memory_space<vmem>>, %arg5: memref<4x128xf32, #tpu.memory_space<vmem>>, %arg6: memref<128x128xbf16, #tpu.memory_space<vmem>>, %arg7: memref<1x128xf32, #tpu.memory_space<vmem>>, %arg8: memref<1x128xf32, #tpu.memory_space<vmem>>, %arg9: memref<1x128xf32, #tpu.memory_space<vmem>>, %arg10: memref<1x128xf32, #tpu.memory_space<vmem>>, %arg11: memref<1x128xf32, #tpu.memory_space<vmem>>, %arg12: memref<1xf32, #tpu.memory_space<smem>>, %arg13: memref<1x1x8xf32, #tpu.memory_space<vmem>>) attributes {dimension_semantics = [#tpu.dimension_semantics<parallel>], iteration_bounds = array<i64: 1>, scalar_prefetch = 0 : i64, scratch_operands = 0 : i64, tpu.core_type = #tpu.core_type<tc>, window_params = [{transform_indices = @transform_0, window_bounds = array<i64: 32, 16>}, {transform_indices = @transform_1, window_bounds = array<i64: 96, 16>}, {pipeline_mode = #tpu.pipeline_mode<synchronous>, transform_indices = @transform_2, window_bounds = array<i64: 16, 128>}, {pipeline_mode = #tpu.pipeline_mode<synchronous>, transform_indices = @transform_3, window_bounds = array<i64: 1, 128>}, {pipeline_mode = #tpu.pipeline_mode<synchronous>, transform_indices = @transform_4, window_bounds = array<i64: 4, 128>}, {pipeline_mode = #tpu.pipeline_mode<synchronous>, transform_indices = @transform_5, window_bounds = array<i64: 128, 128>}, {pipeline_mode = #tpu.pipeline_mode<synchronous>, transform_indices = @transform_6, window_bounds = array<i64: 1, 128>}, {pipeline_mode = #tpu.pipeline_mode<synchronous>, transform_indices = @transform_7, window_bounds = array<i64: 1, 128>}, {pipeline_mode = #tpu.pipeline_mode<synchronous>, transform_indices = @transform_8, window_bounds = array<i64: 1, 128>}, {pipeline_mode = #tpu.pipeline_mode<synchronous>, transform_indices = @transform_9, window_bounds = array<i64: 1, 128>}, {pipeline_mode = #tpu.pipeline_mode<synchronous>, transform_indices = @transform_10, window_bounds = array<i64: 1, 128>}, {transform_indices = @transform_11, window_bounds = array<i64: 1>}, {transform_indices = @transform_12, window_bounds = array<i64: 1, 1, 8>}]} {
    %c0 = arith.constant 0 : index
    %c0_0 = arith.constant 0 : index
    %0 = vector.load %arg3[%c0, %c0_0] : memref<16x128xbf16, #tpu.memory_space<vmem>>, vector<16x128xbf16>
    %c0_1 = arith.constant 0 : index
    %c0_2 = arith.constant 0 : index
    %1 = vector.load %arg4[%c0_1, %c0_2] : memref<1x128xf32, #tpu.memory_space<vmem>>, vector<1x128xf32>
    %c0_3 = arith.constant 0 : index
    %c0_4 = arith.constant 0 : index
    %2 = vector.load %arg1[%c0_3, %c0_4] : memref<32x16xbf16, #tpu.memory_space<vmem>>, vector<32x16xbf16>
    %cst = arith.constant dense<0.000000e+00> : vector<32x128xf32>
    %3 = tpu.matmul %2, %0, %cst {dimension_numbers = #tpu.dot_dimension_numbers<[1], [0], [0], [1], [0, 0, 1, 1], [], []>} : vector<32x16xbf16>, vector<16x128xbf16>, vector<32x128xf32> -> vector<32x128xf32>
    %4 = vector.broadcast %1 : vector<1x128xf32> to vector<32x128xf32>
    %5 = arith.addf %3, %4 : vector<32x128xf32>
    %c0_5 = arith.constant 0 : index
    %c0_6 = arith.constant 0 : index
    %6 = vector.load %arg2[%c0_5, %c0_6] : memref<96x16xbf16, #tpu.memory_space<vmem>>, vector<96x16xbf16>
    %cst_7 = arith.constant dense<0.000000e+00> : vector<96x128xf32>
    %7 = tpu.matmul %6, %0, %cst_7 {dimension_numbers = #tpu.dot_dimension_numbers<[1], [0], [0], [1], [0, 0, 1, 1], [], []>} : vector<96x16xbf16>, vector<16x128xbf16>, vector<96x128xf32> -> vector<96x128xf32>
    %8 = vector.broadcast %1 : vector<1x128xf32> to vector<96x128xf32>
    %9 = arith.addf %7, %8 : vector<96x128xf32>
    %10 = vector.shape_cast %5 : vector<32x128xf32> to vector<8x1x4x128xf32>
    %11 = vector.shape_cast %9 : vector<96x128xf32> to vector<8x3x4x128xf32>
    %12 = vector.extract_strided_slice %11 {offsets = [0, 2, 0, 0], sizes = [8, 1, 4, 128], strides = [1, 1, 1, 1]} : vector<8x3x4x128xf32> to vector<8x1x4x128xf32>
    %13 = vector.shape_cast %12 : vector<8x1x4x128xf32> to vector<8x4x128xf32>
    %c0_8 = arith.constant 0 : index
    %c0_9 = arith.constant 0 : index
    %14 = vector.load %arg5[%c0_8, %c0_9] : memref<4x128xf32, #tpu.memory_space<vmem>>, vector<4x128xf32>
    %15 = vector.shape_cast %14 : vector<4x128xf32> to vector<1x1x4x128xf32>
    %16 = vector.broadcast %15 : vector<1x1x4x128xf32> to vector<8x1x4x128xf32>
    %17 = arith.mulf %10, %16 : vector<8x1x4x128xf32>
    %cst_10 = arith.constant dense<0.000000e+00> : vector<8x1x4xf32>
    %18 = vector.multi_reduction <add>, %17, %cst_10 [3] : vector<8x1x4x128xf32> to vector<8x1x4xf32>
    %19 = vector.broadcast %15 : vector<1x1x4x128xf32> to vector<8x3x4x128xf32>
    %20 = arith.mulf %11, %19 : vector<8x3x4x128xf32>
    %cst_11 = arith.constant dense<0.000000e+00> : vector<8x3x4xf32>
    %21 = vector.multi_reduction <add>, %20, %cst_11 [3] : vector<8x3x4x128xf32> to vector<8x3x4xf32>
    %22 = tpu.iota {dimensions = array<i32: 1>} : vector<8x3x4xi32>
    %c2_i32 = arith.constant 2 : i32
    %23 = vector.broadcast %c2_i32 : i32 to vector<8x3x4xi32>
    %24 = arith.cmpi slt, %22, %23 : vector<8x3x4xi32>
    %cst_12 = arith.constant 0xFF800000 : f32
    %25 = vector.broadcast %cst_12 : f32 to vector<8x3x4xf32>
    %26 = arith.select %24, %21, %25 : vector<8x3x4xi1>, vector<8x3x4xf32>
    %cst_13 = arith.constant dense<0xFF800000> : vector<8x4xf32>
    %27 = vector.multi_reduction <maximumf>, %26, %cst_13 [1] : vector<8x3x4xf32> to vector<8x4xf32>
    %28 = vector.shape_cast %27 : vector<8x4xf32> to vector<8x1x4xf32>
    %29 = arith.maximumf %28, %18 : vector<8x1x4xf32>
    %30 = arith.subf %18, %29 : vector<8x1x4xf32>
    %31 = math.exp %30 : vector<8x1x4xf32>
    %32 = vector.broadcast %29 : vector<8x1x4xf32> to vector<8x3x4xf32>
    %33 = arith.subf %21, %32 : vector<8x3x4xf32>
    %34 = math.exp %33 : vector<8x3x4xf32>
    %cst_14 = arith.constant 0.000000e+00 : f32
    %35 = vector.broadcast %cst_14 : f32 to vector<8x3x4xf32>
    %36 = arith.select %24, %34, %35 : vector<8x3x4xi1>, vector<8x3x4xf32>
    %cst_15 = arith.constant dense<0.000000e+00> : vector<8x4xf32>
    %37 = vector.multi_reduction <add>, %36, %cst_15 [1] : vector<8x3x4xf32> to vector<8x4xf32>
    %38 = vector.shape_cast %37 : vector<8x4xf32> to vector<8x1x4xf32>
    %39 = arith.addf %31, %38 : vector<8x1x4xf32>
    %40 = vector.shape_cast %31 : vector<8x1x4xf32> to vector<8x1x4x1xf32>
    %41 = vector.broadcast %40 : vector<8x1x4x1xf32> to vector<8x1x4x128xf32>
    %42 = arith.mulf %41, %10 : vector<8x1x4x128xf32>
    %43 = vector.shape_cast %36 : vector<8x3x4xf32> to vector<8x3x4x1xf32>
    %44 = vector.broadcast %43 : vector<8x3x4x1xf32> to vector<8x3x4x128xf32>
    %45 = arith.mulf %44, %11 : vector<8x3x4x128xf32>
    %cst_16 = arith.constant dense<0.000000e+00> : vector<8x4x128xf32>
    %46 = vector.multi_reduction <add>, %45, %cst_16 [1] : vector<8x3x4x128xf32> to vector<8x4x128xf32>
    %47 = vector.shape_cast %46 : vector<8x4x128xf32> to vector<8x1x4x128xf32>
    %48 = arith.addf %42, %47 : vector<8x1x4x128xf32>
    %cst_17 = arith.constant 1.000000e+00 : f32
    %49 = vector.broadcast %cst_17 : f32 to vector<8x1x4xf32>
    %50 = arith.divf %49, %39 : vector<8x1x4xf32>
    %51 = vector.shape_cast %50 : vector<8x1x4xf32> to vector<8x1x4x1xf32>
    %52 = vector.broadcast %51 : vector<8x1x4x1xf32> to vector<8x1x4x128xf32>
    %53 = arith.mulf %48, %52 : vector<8x1x4x128xf32>
    %54 = vector.shape_cast %53 : vector<8x1x4x128xf32> to vector<8x4x128xf32>
    %55 = arith.subf %13, %54 : vector<8x4x128xf32>
    %56 = math.absf %55 : vector<8x4x128xf32>
    %57 = vector.shape_cast %56 : vector<8x4x128xf32> to vector<32x128xf32>
    %58 = arith.truncf %57 : vector<32x128xf32> to vector<32x128xbf16>
    %c0_18 = arith.constant 0 : index
    %c0_19 = arith.constant 0 : index
    %59 = vector.load %arg6[%c0_18, %c0_19] : memref<128x128xbf16, #tpu.memory_space<vmem>>, vector<128x128xbf16>
    %cst_20 = arith.constant dense<0.000000e+00> : vector<32x128xf32>
    %60 = tpu.matmul %58, %59, %cst_20 {dimension_numbers = #tpu.dot_dimension_numbers<[1], [0], [0], [1], [0, 0, 1, 1], [], []>} : vector<32x128xbf16>, vector<128x128xbf16>, vector<32x128xf32> -> vector<32x128xf32>
    %c0_21 = arith.constant 0 : index
    %c0_22 = arith.constant 0 : index
    %61 = vector.load %arg7[%c0_21, %c0_22] : memref<1x128xf32, #tpu.memory_space<vmem>>, vector<1x128xf32>
    %62 = vector.broadcast %61 : vector<1x128xf32> to vector<32x128xf32>
    %63 = arith.addf %60, %62 : vector<32x128xf32>
    %cst_23 = arith.constant 0.000000e+00 : f32
    %64 = vector.broadcast %cst_23 : f32 to vector<32x128xf32>
    %65 = arith.maximumf %63, %64 : vector<32x128xf32>
    %cst_24 = arith.constant dense<0.000000e+00> : vector<32xf32>
    %66 = vector.multi_reduction <add>, %65, %cst_24 [1] : vector<32x128xf32> to vector<32xf32>
    %67 = vector.shape_cast %66 : vector<32xf32> to vector<32x1xf32>
    %cst_25 = arith.constant 3.125000e-02 : f32
    %68 = vector.broadcast %cst_25 : f32 to vector<32x1xf32>
    %69 = arith.mulf %67, %68 : vector<32x1xf32>
    %70 = arith.mulf %65, %65 : vector<32x128xf32>
    %cst_26 = arith.constant dense<0.000000e+00> : vector<32xf32>
    %71 = vector.multi_reduction <add>, %70, %cst_26 [1] : vector<32x128xf32> to vector<32xf32>
    %72 = vector.shape_cast %71 : vector<32xf32> to vector<32x1xf32>
    %cst_27 = arith.constant 3.125000e-02 : f32
    %73 = vector.broadcast %cst_27 : f32 to vector<32x1xf32>
    %74 = arith.mulf %72, %73 : vector<32x1xf32>
    %75 = arith.mulf %69, %69 : vector<32x1xf32>
    %76 = arith.subf %74, %75 : vector<32x1xf32>
    %77 = vector.broadcast %69 : vector<32x1xf32> to vector<32x128xf32>
    %78 = arith.subf %65, %77 : vector<32x128xf32>
    %cst_28 = arith.constant 9.99999974E-6 : f32
    %79 = vector.broadcast %cst_28 : f32 to vector<32x1xf32>
    %80 = arith.addf %76, %79 : vector<32x1xf32>
    %81 = math.rsqrt %80 : vector<32x1xf32>
    %82 = vector.broadcast %81 : vector<32x1xf32> to vector<32x128xf32>
    %83 = arith.mulf %78, %82 : vector<32x128xf32>
    %c0_29 = arith.constant 0 : index
    %c0_30 = arith.constant 0 : index
    %84 = vector.load %arg8[%c0_29, %c0_30] : memref<1x128xf32, #tpu.memory_space<vmem>>, vector<1x128xf32>
    %85 = vector.broadcast %84 : vector<1x128xf32> to vector<32x128xf32>
    %86 = arith.mulf %83, %85 : vector<32x128xf32>
    %c0_31 = arith.constant 0 : index
    %c0_32 = arith.constant 0 : index
    %87 = vector.load %arg9[%c0_31, %c0_32] : memref<1x128xf32, #tpu.memory_space<vmem>>, vector<1x128xf32>
    %88 = vector.broadcast %87 : vector<1x128xf32> to vector<32x128xf32>
    %89 = arith.addf %86, %88 : vector<32x128xf32>
    %cst_33 = arith.constant dense<0.000000e+00> : vector<8x128xf32>
    %90 = vector.multi_reduction <add>, %13, %cst_33 [1] : vector<8x4x128xf32> to vector<8x128xf32>
    %cst_34 = arith.constant 4.000000e+00 : f32
    %91 = vector.broadcast %cst_34 : f32 to vector<8x128xf32>
    %92 = arith.divf %90, %91 : vector<8x128xf32>
    %93 = vector.shape_cast %89 : vector<32x128xf32> to vector<8x4x128xf32>
    %cst_35 = arith.constant dense<0.000000e+00> : vector<8x128xf32>
    %94 = vector.multi_reduction <add>, %93, %cst_35 [1] : vector<8x4x128xf32> to vector<8x128xf32>
    %cst_36 = arith.constant 4.000000e+00 : f32
    %95 = vector.broadcast %cst_36 : f32 to vector<8x128xf32>
    %96 = arith.divf %94, %95 : vector<8x128xf32>
    %c0_37 = arith.constant 0 : index
    %c0_38 = arith.constant 0 : index
    %97 = vector.load %arg10[%c0_37, %c0_38] : memref<1x128xf32, #tpu.memory_space<vmem>>, vector<1x128xf32>
    %cst_39 = arith.constant dense<0.000000e+00> : vector<1x8xf32>
    %98 = tpu.matmul %97, %92, %cst_39 {dimension_numbers = #tpu.dot_dimension_numbers<[1], [1], [0], [0], [0, 0, 1, 0], [], []>} : vector<1x128xf32>, vector<8x128xf32>, vector<1x8xf32> -> vector<1x8xf32>
    %c0_40 = arith.constant 0 : index
    %c0_41 = arith.constant 0 : index
    %99 = vector.load %arg11[%c0_40, %c0_41] : memref<1x128xf32, #tpu.memory_space<vmem>>, vector<1x128xf32>
    %cst_42 = arith.constant dense<0.000000e+00> : vector<1x8xf32>
    %100 = tpu.matmul %99, %96, %cst_42 {dimension_numbers = #tpu.dot_dimension_numbers<[1], [1], [0], [0], [0, 0, 1, 0], [], []>} : vector<1x128xf32>, vector<8x128xf32>, vector<1x8xf32> -> vector<1x8xf32>
    %101 = arith.addf %98, %100 : vector<1x8xf32>
    %c0_43 = arith.constant 0 : index
    %102 = memref.load %arg12[%c0_43] : memref<1xf32, #tpu.memory_space<smem>>
    %103 = vector.broadcast %102 : f32 to vector<1x8xf32>
    %104 = arith.addf %101, %103 : vector<1x8xf32>
    %105 = vector.shape_cast %104 : vector<1x8xf32> to vector<1x1x8xf32>
    %c0_44 = arith.constant 0 : index
    %c0_45 = arith.constant 0 : index
    %c0_46 = arith.constant 0 : index
    %106 = vector.load %arg13[%c0_44, %c0_45, %c0_46] : memref<1x1x8xf32, #tpu.memory_space<vmem>>, vector<1x1x8xf32>
    tpu.vector_store %arg13[%c0_44, %c0_45, %c0_46], %105 {strides = array<i32>} : memref<1x1x8xf32, #tpu.memory_space<vmem>>, vector<1x1x8xf32>,
    return
  }
  func.func @transform_0(%arg0: i32) -> (i32, i32) {
    %c0_i32 = arith.constant 0 : i32
    %c0_i32_0 = arith.constant 0 : i32
    return %arg0, %c0_i32 : i32, i32
  }
  func.func @transform_1(%arg0: i32) -> (i32, i32) {
    %c0_i32 = arith.constant 0 : i32
    %c0_i32_0 = arith.constant 0 : i32
    return %arg0, %c0_i32 : i32, i32
  }
  func.func @transform_2(%arg0: i32) -> (i32, i32) {
    %c0_i32 = arith.constant 0 : i32
    %c0_i32_0 = arith.constant 0 : i32
    %c0_i32_1 = arith.constant 0 : i32
    return %c0_i32, %c0_i32_0 : i32, i32
  }
  func.func @transform_3(%arg0: i32) -> (i32, i32) {
    %c0_i32 = arith.constant 0 : i32
    %c0_i32_0 = arith.constant 0 : i32
    %c0_i32_1 = arith.constant 0 : i32
    return %c0_i32, %c0_i32_0 : i32, i32
  }
  func.func @transform_4(%arg0: i32) -> (i32, i32) {
    %c0_i32 = arith.constant 0 : i32
    %c0_i32_0 = arith.constant 0 : i32
    %c0_i32_1 = arith.constant 0 : i32
    return %c0_i32, %c0_i32_0 : i32, i32
  }
  func.func @transform_5(%arg0: i32) -> (i32, i32) {
    %c0_i32 = arith.constant 0 : i32
    %c0_i32_0 = arith.constant 0 : i32
    %c0_i32_1 = arith.constant 0 : i32
    return %c0_i32, %c0_i32_0 : i32, i32
  }
  func.func @transform_6(%arg0: i32) -> (i32, i32) {
    %c0_i32 = arith.constant 0 : i32
    %c0_i32_0 = arith.constant 0 : i32
    %c0_i32_1 = arith.constant 0 : i32
    return %c0_i32, %c0_i32_0 : i32, i32
  }
  func.func @transform_7(%arg0: i32) -> (i32, i32) {
    %c0_i32 = arith.constant 0 : i32
    %c0_i32_0 = arith.constant 0 : i32
    %c0_i32_1 = arith.constant 0 : i32
    return %c0_i32, %c0_i32_0 : i32, i32
  }
  func.func @transform_8(%arg0: i32) -> (i32, i32) {
    %c0_i32 = arith.constant 0 : i32
    %c0_i32_0 = arith.constant 0 : i32
    %c0_i32_1 = arith.constant 0 : i32
    return %c0_i32, %c0_i32_0 : i32, i32
  }
  func.func @transform_9(%arg0: i32) -> (i32, i32) {
    %c0_i32 = arith.constant 0 : i32
    %c0_i32_0 = arith.constant 0 : i32
    %c0_i32_1 = arith.constant 0 : i32
    return %c0_i32, %c0_i32_0 : i32, i32
  }
  func.func @transform_10(%arg0: i32) -> (i32, i32) {
    %c0_i32 = arith.constant 0 : i32
    %c0_i32_0 = arith.constant 0 : i32
    %c0_i32_1 = arith.constant 0 : i32
    return %c0_i32, %c0_i32_0 : i32, i32
  }
  func.func @transform_11(%arg0: i32) -> i32 {
    %c0_i32 = arith.constant 0 : i32
    %c0_i32_0 = arith.constant 0 : i32
    return %c0_i32 : i32
  }
  func.func @transform_12(%arg0: i32) -> (i32, i32, i32) {
    %c0_i32 = arith.constant 0 : i32
    %c0_i32_0 = arith.constant 0 : i32
    %c0_i32_1 = arith.constant 0 : i32
    return %arg0, %c0_i32, %c0_i32_0 : i32, i32, i32
  }
}

</mosaic_0001>

<bundles_post_ra>
// kernel: tpu_custom_call.1
= control target key start
LH: loop header
LB: loop body
LE: loop exit
PB: predicated region body
PF: predicated region fallthrough
CT: control target
= control target key end

     0   :  { %vm73_vm0 = vcmask 130048   ;;  %s3434_s0 = inlined_call_operand.vmem [shape: bf16[32,16], index: 0, kind: input, shape index: {}]   ;;  %s3435_s1 = inlined_call_operand.vmem [shape: bf16[96,16], index: 1, kind: input, shape index: {}]   ;;  %s3436_s2 = inlined_call_operand.vmem [shape: bf16[16,128], index: 2, kind: input, shape index: {}]   ;;  %s3437_s3 = inlined_call_operand.vmem [shape: f32[1,128], index: 3, kind: input, shape index: {}]   ;;  %s3438_s4 = inlined_call_operand.vmem [shape: f32[4,128], index: 4, kind: input, shape index: {}]   ;;  %s3439_s5 = inlined_call_operand.vmem [shape: bf16[128,128], index: 5, kind: input, shape index: {}]   ;;  %s3440_s6 = inlined_call_operand.vmem [shape: f32[1,128], index: 6, kind: input, shape index: {}]   ;;  %s3441_s7 = inlined_call_operand.vmem [shape: f32[1,128], index: 7, kind: input, shape index: {}]   ;;  %s3442_s8 = inlined_call_operand.vmem [shape: f32[1,128], index: 8, kind: input, shape index: {}]   ;;  %s3443_s9 = inlined_call_operand.vmem [shape: f32[1,128], index: 9, kind: input, shape index: {}]   ;;  %s3444_s10 = inlined_call_operand.vmem [shape: f32[1,128], index: 10, kind: input, shape index: {}]   ;;  %s3445_s11 = inlined_call_operand.<no memory space> [shape: f32[1], index: 11, kind: input, shape index: {}]   ;;  %s3446_s12 = inlined_call_operand.hbm [shape: f32[1,1,8], index: 12, kind: output, shape index: {}]  }
   0x1   :  { %v2320_v0 = vld [vmem:[%s3436_s2] sm:$0xff]   ;;  %v2322_v2 = vld [vmem:[%s3435_s1 + $0x8] sm:$0xff]   ;;  %v2323_v3 = vld [vmem:[%s3435_s1 + $0x10] sm:$0xff]  }
   0x2   :  { %v2321_v1 = vld [vmem:[%s3435_s1] sm:$0xff]   ;;  %2270 = vmatprep.subr.bf16.mxu1 %v2320_v0  ;;  %2264 = vmatprep.subr.bf16.mxu0 %v2320_v0  ;;  %v2324_v5 = vld [vmem:[%s3435_s1 + $0x18] sm:$0xff]   ;;  %v2328_v6 = vld [vmem:[%s3434_s0 + $0x8] sm:$0xff]  }
   0x3   :  { %2271 = vmatpush3.bf16.msra.mxu1 %v2320_v0  ;;  %2272 = vmatprep.mubr.msk.bf16.mxu1 %vm73_vm0, %v2321_v1  ;;  %v2327_v4 = vld [vmem:[%s3434_s0] sm:$0xff]  }
   0x4   :  { %2265 = vmatpush3.bf16.msra.mxu0 %v2320_v0  ;;  %v2325_v7 = vld [vmem:[%s3435_s1 + $0x20] sm:$0xff]   ;;  %2266 = vmatprep.mubr.msk.bf16.mxu0 %vm73_vm0, %v2327_v4 }
   0x6   :  { %2273 = vmatmul.mubr.msk.bf16.vlgmr.msra.gmra.mrb[0].mxu1 %vm73_vm0, %v2322_v2 }
   0x7   :  { %2276 = vmatprep.mubr.msk.bf16.mxu1 %vm73_vm0, %v2323_v3  ;;  %2267 = vmatmul.mubr.msk.bf16.vlgmr.msra.gmra.mrb[0].mxu0 %vm73_vm0, %v2328_v6 }
   0xe   :  { %2277 = vmatmul.mubr.msk.bf16.gmra.mrb[4].mxu1 %vm73_vm0, %v2324_v5 }
   0xf   :  { %18 = vsyncpa [#allocation4], 0  ;;  %2280 = vmatprep.mubr.msk.bf16.mxu1 %vm73_vm0, %v2325_v7  ;;  %v2326_v8 = vld [vmem:[%s3435_s1 + $0x28] sm:$0xff]   ;;  %v2556_v9 = vld [vmem:[%s3437_s3] ss:$0 sm:$0xff]  ;;  %vm327_vm1 = vcmask 1043456  }
  0x10   :  { %v2561_v11 = vld [vmem:[%s3438_s4] sm:$0xf]  ;;  %vm573_vm2 = vcmask 1041409   ;;  %vm575_vm3 = vcmask 1042434   ;;  %vm607_vm5 = vcmask 26624   ;;  %vm2451_vm6 = vmmov 0  }
  0x11   :  { %vm2025_vm7 = vcmask 1043459   ;;  %vm2027_vm8 = vcmask 1044484   ;;  %vm2029_vm9 = vcmask 1045509   ;;  %vm2031_vm10 = vcmask 1046534  }
  0x12   :  { %vm2033_vm11 = vcmask 1047559   ;;  %vm2195_vm12 = vcmask 57344  }
  0x16   :  { %2281 = vmatmul.mubr.msk.bf16.gmra.mrb[8].mxu1 %vm73_vm0, %v2326_v8 }
  0xd9   :  { %v2274_v10 = vpop.f32.mrb[0].mxu1 }
  0xda   :  { %v2564_v12 = vadd.f32 %v2274_v10, %v2556_v9  ;;  %v223_v13 = vpop.f32.mrb[1].mxu1  ;;  %v2580_v21 = vpop.f32.mrb[0].mxu0 }
  0xdb   :  { %v2567_v14 = vadd.f32 %v2556_v9, %v223_v13  ;;  %v2275_v15 = vpop.f32.mrb[2].mxu1  ;;  %v2588_v25 = vpop.f32.mrb[1].mxu0 }
  0xdc   :  { %v2571_v16 = vcombine.high %v2564_v12, %v2564_v12  ;;  %v2574_v17 = vadd.f32 %v2275_v15, %v2556_v9  ;;  %v226_v18 = vpop.f32.mrb[3].mxu1  ;;  %v356_v19 = vmul.f32 %v2561_v11, %v2564_v12  ;;  %v2601_v30 = vpop.f32.mrb[2].mxu0 }
  0xdd   :  { %v352_v20 = vmul.f32 %v2561_v11, %v2567_v14  ;;  %v2583_v22 = vadd.f32 %v2556_v9, %v226_v18  ;;  %v2599_v29 = vcombine.high %v2567_v14, %v2567_v14  ;;  %v2603_v31 = vpop.f32.mrb[3].mxu0 }
  0xde   :  { %3480 = vst [vmem:[#allocation6_spill] sm:$0xff] %v2571_v16  ;;  %v388_v23 = vsel %vm327_vm1, %v356_v19, 0.0  ;;  %v357_v24 = vmul.f32 %v2561_v11, %v2571_v16  ;;  %v358_v27 = vmul.f32 %v2561_v11, %v2574_v17  ;;  %v2595_v28 = vcombine.high %v2574_v17, %v2574_v17 }
  0xdf   :  { %3481 = vst [vmem:[#allocation7_spill] sm:$0xff] %v2583_v22  ;;  %389 = vadd.xlane.f32.xlu1 %v388_v23  ;;  %v376_v26 = vsel %vm327_vm1, %v352_v20, 0.0  ;;  %v2613_v37 = vcombine.high %v2583_v22, %v2583_v22  ;;  %v353_v40 = vmul.f32 %v2561_v11, %v2599_v29  ;;  %v354_v46 = vmul.f32 %v2561_v11, %v2583_v22 }
  0xe0   :  { %377 = vadd.xlane.f32.xlu0 %v376_v26  ;;  %v391_v35 = vsel %vm327_vm1, %v357_v24, 0.0  ;;  %v359_v36 = vmul.f32 %v2561_v11, %v2595_v28  ;;  %v394_v39 = vsel %vm327_vm1, %v358_v27, 0.0 }
  0xe1   :  { %v2278_v32 = vpop.f32.mrb[4].mxu1  ;;  %v355_v44 = vmul.f32 %v2561_v11, %v2613_v37  ;;  %v379_v45 = vsel %vm327_vm1, %v353_v40, 0.0  ;;  %v382_v53 = vsel %vm327_vm1, %v354_v46, 0.0 }
  0xe2   :  { %v2606_v33 = vadd.f32 %v2278_v32, %v2556_v9  ;;  %v239_v34 = vpop.f32.mrb[5].mxu1  ;;  %v397_v43 = vsel %vm327_vm1, %v359_v36, 0.0 }
  0xe3   :  { %392 = vadd.xlane.f32.xlu1 %v391_v35  ;;  %v2279_v38 = vpop.f32.mrb[6].mxu1  ;;  %v385_v51 = vsel %vm327_vm1, %v355_v44, 0.0  ;;  %v2639_v57 = vadd.f32 %v2556_v9, %v239_v34 }
  0xe4   :  { %3482 = vst [vmem:[#allocation8_spill] sm:$0xff] %v2606_v33  ;;  %v242_v41 = vpop.f32.mrb[7].mxu1  ;;  %395 = vadd.xlane.f32.xlu0 %v394_v39  ;;  %v2620_v42 = vcombine.high %v2606_v33, %v2606_v33  ;;  %v364_v49 = vmul.f32 %v2561_v11, %v2606_v33  ;;  %v2651_v62 = vadd.f32 %v2279_v38, %v2556_v9 }
  0xe5   :  { %v2635_v54 = vadd.f32 %v2556_v9, %v242_v41  ;;  %3485 = vst [vmem:[#allocation11_spill] sm:$0xff] %v2639_v57  ;;  %v360_v60 = vmul.f32 %v2561_v11, %v2639_v57  ;;  %v2664_v4 = vcombine.high %v2639_v57, %v2639_v57  ;;  %v2711_v39 = vadd.f32 %v2556_v9, %v2588_v25 }
  0xe6   :  { %3483 = vst [vmem:[#allocation9_spill] sm:$0xff] %v2620_v42  ;;  %v365_v47 = vmul.f32 %v2561_v11, %v2620_v42  ;;  %v412_v58 = vsel %vm327_vm1, %v364_v49, 0.0  ;;  %3487 = vst [vmem:[#allocation13_spill] sm:$0xff] %v2651_v62  ;;  %v366_v3 = vmul.f32 %v2561_v11, %v2651_v62  ;;  %v2677_v13 = vcombine.high %v2651_v62, %v2651_v62 }
  0xe7   :  { %398 = vadd.xlane.f32.xlu1 %v397_v43  ;;  %3484 = vst [vmem:[#allocation10_spill] sm:$0xff] %v2635_v54  ;;  %v362_v59 = vmul.f32 %v2561_v11, %v2635_v54  ;;  %v2648_v61 = vcombine.high %v2635_v54, %v2635_v54  ;;  %v400_v2 = vsel %vm327_vm1, %v360_v60, 0.0  ;;  %3489 = vst [vmem:[#allocation15_spill] sm:$0xff] %v2664_v4 }
  0xe8   :  { %380 = vadd.xlane.f32.xlu0 %v379_v45  ;;  %v415_v55 = vsel %vm327_vm1, %v365_v47, 0.0  ;;  %v418_v8 = vsel %vm327_vm1, %v366_v3, 0.0  ;;  %v361_v10 = vmul.f32 %v2561_v11, %v2664_v4  ;;  %3491 = vst [vmem:[#allocation17_spill] sm:$0xff] %v2677_v13  ;;  %v367_v20 = vmul.f32 %v2561_v11, %v2677_v13  ;;  %3497 = vst [vmem:[#allocation23_spill] sm:$0xff] %v2711_v39 }
  0xe9   :  { %v2282_v48 = vpop.f32.mrb[8].mxu1  ;;  %3486 = vst [vmem:[#allocation12_spill] sm:$0xff] %v2648_v61  ;;  %v406_v0 = vsel %vm327_vm1, %v362_v59, 0.0  ;;  %v363_v1 = vmul.f32 %v2561_v11, %v2648_v61  ;;  %v2725_v25 = vcombine.high %v2711_v39, %v2711_v39  ;;  %v2730_v47 = vadd.f32 %v2556_v9, %v2603_v31 }
  0xea   :  { %v255_v50 = vpop.f32.mrb[9].mxu1  ;;  %v403_v19 = vsel %vm327_vm1, %v361_v10, 0.0  ;;  %v2691_v26 = vadd.f32 %v2282_v48, %v2556_v9  ;;  %v421_v34 = vsel %vm327_vm1, %v367_v20, 0.0  ;;  %v2743_v31 = vadd.f32 %v2580_v21, %v2556_v9 }
  0xeb   :  { %386 = vadd.xlane.f32.xlu1 %v385_v51  ;;  %v2283_v52 = vpop.f32.mrb[10].mxu1  ;;  %v2654_v63 = vadd.f32 %v2556_v9, %v255_v50  ;;  %v409_v7 = vsel %vm327_vm1, %v363_v1, 0.0  ;;  %3499 = vst [vmem:[#allocation25_spill] sm:$0xff] %v2730_v47  ;;  %v320_v51 = vmul.f32 %v2561_v11, %v2725_v25  ;;  %v2755_v60 = vadd.f32 %v2601_v30, %v2556_v9 }
  0xec   :  { %383 = vadd.xlane.f32.xlu0 %v382_v53  ;;  %v258_v56 = vpop.f32.mrb[11].mxu1  ;;  %v2669_v6 = vadd.f32 %v2283_v52, %v2556_v9  ;;  %3493 = vst [vmem:[#allocation19_spill] sm:$0xff] %v2691_v26  ;;  %v372_v35 = vmul.f32 %v2561_v11, %v2691_v26  ;;  %v2703_v36 = vcombine.high %v2691_v26, %v2691_v26  ;;  %3500 = vst [vmem:[#allocation26_spill] sm:$0xff] %v2743_v31 }
  0xed   :  { %3488 = vst [vmem:[#allocation14_spill] sm:$0xff] %v2654_v63  ;;  %v368_v5 = vmul.f32 %v2561_v11, %v2654_v63  ;;  %v2687_v23 = vcombine.high %v2654_v63, %v2654_v63  ;;  %v2694_v27 = vadd.f32 %v2556_v9, %v258_v56  ;;  %v319_v52 = vmul.f32 %v2561_v11, %v2711_v39 }
  0xee   :  { %3490 = vst [vmem:[#allocation16_spill] sm:$0xff] %v2669_v6  ;;  %v374_v18 = vmul.f32 %v2561_v11, %v2669_v6  ;;  %3495 = vst [vmem:[#allocation21_spill] sm:$0xff] %v2703_v36  ;;  %v2707_v38 = vcombine.high %v2669_v6, %v2669_v6  ;;  %v436_v44 = vsel %vm327_vm1, %v372_v35, 0.0  ;;  %v373_v45 = vmul.f32 %v2561_v11, %v2703_v36 }
  0xef   :  { %416 = vadd.xlane.f32.xlu1 %v415_v55  ;;  %v424_v15 = vsel %vm327_vm1, %v368_v5, 0.0  ;;  %3492 = vst [vmem:[#allocation18_spill] sm:$0xff] %v2687_v23  ;;  %3494 = vst [vmem:[#allocation20_spill] sm:$0xff] %v2694_v27  ;;  %v369_v32 = vmul.f32 %v2561_v11, %v2687_v23  ;;  %v2718_v43 = vcombine.high %v2694_v27, %v2694_v27  ;;  %v328_v59 = vsel %vm327_vm1, %v319_v52, 0.0 }
  0xf0   :  { %413 = vadd.xlane.f32.xlu0 %v412_v58  ;;  %v442_v24 = vsel %vm327_vm1, %v374_v18, 0.0  ;;  %3496 = vst [vmem:[#allocation22_spill] sm:$0xff] %v2707_v38  ;;  %v375_v41 = vmul.f32 %v2561_v11, %v2707_v38  ;;  %v439_v49 = vsel %vm327_vm1, %v373_v45, 0.0  ;;  %v370_v50 = vmul.f32 %v2561_v11, %v2694_v27  ;;  %3502 = vst [vmem:[#allocation28_spill] sm:$0xff] %v2755_v60 }
  0xf1   :  { %v427_v40 = vsel %vm327_vm1, %v369_v32, 0.0  ;;  %3498 = vst [vmem:[#allocation24_spill] sm:$0xff] %v2718_v43  ;;  %v371_v48 = vmul.f32 %v2561_v11, %v2718_v43  ;;  %v2748_v55 = vcombine.high %v2730_v47, %v2730_v47  ;;  %v331_v58 = vsel %vm327_vm1, %v320_v51, 0.0 }
  0xf2   :  { %v445_v46 = vsel %vm327_vm1, %v375_v41, 0.0  ;;  %v430_v56 = vsel %vm327_vm1, %v370_v50, 0.0  ;;  %v321_v1 = vmul.f32 %v2561_v11, %v2730_v47  ;;  %v2770_v9 = vcombine.high %v2755_v60, %v2755_v60 }
  0xf3   :  { %407 = vadd.xlane.f32.xlu1 %v406_v0  ;;  %v433_v53 = vsel %vm327_vm1, %v371_v48, 0.0  ;;  %3501 = vst [vmem:[#allocation27_spill] sm:$0xff] %v2748_v55  ;;  %v322_v21 = vmul.f32 %v2561_v11, %v2748_v55  ;;  %v2761_v0 = vcombine.high %v2743_v31, %v2743_v31  ;;  %v323_v5 = vmul.f32 %v2561_v11, %v2743_v31 }
  0xf4   :  { %401 = vadd.xlane.f32.xlu0 %v400_v2  ;;  %3504 = vst [vmem:[#allocation30_spill] sm:$0xff] %v2770_v9  ;;  %v334_v30 = vsel %vm327_vm1, %v321_v1, 0.0  ;;  %v448_v32 = vlaneseq }
  0xf5   :  { %3503 = vst [vmem:[#allocation29_spill] sm:$0xff] %v2761_v0  ;;  %v337_v2 = vsel %vm327_vm1, %v322_v21, 0.0  ;;  %v324_v3 = vmul.f32 %v2561_v11, %v2761_v0  ;;  %v340_v10 = vsel %vm327_vm1, %v323_v5, 0.0 }
  0xf6   :  { %v476_v41 = vand.u32 127, %v448_v32 }
  0xf7   :  { %410 = vadd.xlane.f32.xlu1 %v409_v7  ;;  %v343_v7 = vsel %vm327_vm1, %v324_v3, 0.0 }
  0xf8   :  { %419 = vadd.xlane.f32.xlu0 %v418_v8  ;;  %v326_v8 = vmul.f32 %v2561_v11, %v2770_v9 }
  0xfa   :  { %v349_v18 = vsel %vm327_vm1, %v326_v8, 0.0 }
  0xfb   :  { %425 = vadd.xlane.f32.xlu1 %v424_v15  ;;  %v325_v15 = vmul.f32 %v2561_v11, %v2755_v60 }
  0xfc   :  { %404 = vadd.xlane.f32.xlu0 %v403_v19 }
  0xfd   :  { %v346_v19 = vsel %vm327_vm1, %v325_v15, 0.0 }
  0xff   :  { %443 = vadd.xlane.f32.xlu1 %v442_v24 }
 0x100   :  { %422 = vadd.xlane.f32.xlu0 %v421_v34 }
 0x103   :  { %428 = vadd.xlane.f32.xlu1 %v427_v40  ;;  %v2791_v40 = vshrl.u32 %v448_v32, 7 }
 0x104   :  { %437 = vadd.xlane.f32.xlu0 %v436_v44 }
 0x105   :  { %v2798_v45 = vsub.s32 %v476_v41, %v2791_v40  ;;  %vm450_vm4 = vcmp.lt.s32.totalorder %v2791_v40, 2 }
 0x107   :  { %446 = vadd.xlane.f32.xlu1 %v445_v46 }
 0x108   :  { %440 = vadd.xlane.f32.xlu0 %v439_v49 }
 0x10b   :  { %434 = vadd.xlane.f32.xlu1 %v433_v53 }
 0x10c   :  { %431 = vadd.xlane.f32.xlu0 %v430_v56 }
 0x10f   :  { %332 = vadd.xlane.f32.xlu1 %v331_v58 }
 0x110   :  { %329 = vadd.xlane.f32.xlu0 %v328_v59 }
 0x113   :  { %338 = vadd.xlane.f32.xlu1 %v337_v2 }
 0x114   :  { %335 = vadd.xlane.f32.xlu0 %v334_v30 }
 0x117   :  { %344 = vadd.xlane.f32.xlu1 %v343_v7 }
 0x118   :  { %341 = vadd.xlane.f32.xlu0 %v340_v10 }
 0x11b   :  { %350 = vadd.xlane.f32.xlu1 %v349_v18 }
 0x11c   :  { %347 = vadd.xlane.f32.xlu0 %v346_v19 }
 0x16c   :  { %v2783_v20 = vpop.xlane.xlu1 %389 }
 0x16d   :  { %v2785_v24 = vpop.xlane.xlu0 %377  ;;  %v496_v50 = vrot.slane %v2783_v20, %v2798_v45 }
 0x16e   :  { %v480_v58 = vrot.slane %v2785_v24, %v2798_v45 }
 0x170   :  { %v2787_v34 = vpop.xlane.xlu1 %392 }
 0x171   :  { %v2789_v35 = vpop.xlane.xlu0 %395  ;;  %v500_v59 = vrot.slane %v2787_v34, %v2798_v45 }
 0x172   :  { %v504_v7 = vrot.slane %v2789_v35, %v2798_v45 }
 0x174   :  { %v2793_v11 = vpop.xlane.xlu1 %398 }
 0x175   :  { %v2795_v44 = vpop.xlane.xlu0 %380  ;;  %v508_v1 = vrot.slane %v2793_v11, %v2798_v45 }
 0x176   :  { %v484_v51 = vrot.slane %v2795_v44, %v2798_v45 }
 0x177   :  { %v579_v18 = vsel %vm573_vm2, %v508_v1, %v504_v7 }
 0x178   :  { %v2800_v46 = vpop.xlane.xlu1 %386  ;;  %v574_v2 = vsel %vm573_vm2, %v484_v51, %v480_v58 }
 0x179   :  { %v492_v48 = vrot.slane %v2800_v46, %v2798_v45  ;;  %v2804_v49 = vpop.xlane.xlu0 %383 }
 0x17a   :  { %v488_v53 = vrot.slane %v2804_v49, %v2798_v45 }
 0x17b   :  { %v577_v52 = vsel %vm573_vm2, %v496_v50, %v492_v48 }
 0x17c   :  { %v2813_v56 = vpop.xlane.xlu1 %416  ;;  %v578_v3 = vsel %vm575_vm3, %v500_v59, %v577_v52  ;;  %v576_v30 = vsel %vm575_vm3, %v488_v53, %v574_v2 }
 0x17d   :  { %v2819_v21 = vpop.xlane.xlu0 %413  ;;  %v600_v10 = vsel %vm450_vm4, %v578_v3, -inf  ;;  %v599_v19 = vsel %vm450_vm4, %v576_v30, -inf  ;;  %v532_v32 = vrot.slane %v2813_v56, %v2798_v45 }
 0x17e   :  { %v528_v41 = vrot.slane %v2819_v21, %v2798_v45  ;;  %v615_v52 = vsel %vm607_vm5, %v600_v10, -inf  ;;  %v608_v53 = vsel %vm607_vm5, %v599_v19, -inf }
 0x17f   :  { %v616_v3 = vrot.slane %v615_v52, 4  ;;  %v609_v30 = vrot.slane %v608_v53, 4 }
 0x180   :  { %v2827_v5 = vpop.xlane.xlu1 %407  ;;  %v583_v1 = vsel %vm573_vm2, %v532_v32, %v528_v41 }
 0x181   :  { %v2831_v8 = vpop.xlane.xlu0 %401  ;;  %v520_v10 = vrot.slane %v2827_v5, %v2798_v45 }
 0x182   :  { %v512_v15 = vrot.slane %v2831_v8, %v2798_v45 }
 0x184   :  { %v580_v48 = vsel %vm575_vm3, %v512_v15, %v579_v18  ;;  %v2845_v50 = vpop.xlane.xlu1 %410 }
 0x185   :  { %v2847_v51 = vpop.xlane.xlu0 %419  ;;  %v601_v59 = vsel %vm450_vm4, %v580_v48, -inf  ;;  %v524_v48 = vrot.slane %v2845_v50, %v2798_v45 }
 0x186   :  { %v536_v58 = vrot.slane %v2847_v51, %v2798_v45  ;;  %v622_v18 = vsel %vm607_vm5, %v601_v59, -inf  ;;  %v610_v59 = vmax.f32 %v608_v53, %v609_v30 }
 0x188   :  { %v2856_v2 = vpop.xlane.xlu1 %425  ;;  %v584_v7 = vsel %vm575_vm3, %v536_v58, %v583_v1  ;;  %v617_v58 = vmax.f32 %v615_v52, %v616_v3  ;;  %v623_v1 = vrot.slane %v622_v18, 4 }
 0x189   :  { %v2859_v15 = vpop.xlane.xlu0 %404  ;;  %v603_v32 = vsel %vm450_vm4, %v584_v7, -inf  ;;  %v544_v26 = vrot.slane %v2856_v2, %v2798_v45 }
 0x18a   :  { %v516_v19 = vrot.slane %v2859_v15, %v2798_v45  ;;  %v618_v3 = vrot.slane %v617_v58, 2  ;;  %v624_v27 = vmax.f32 %v622_v18, %v623_v1 }
 0x18c   :  { %v581_v41 = vsel %vm573_vm2, %v520_v10, %v516_v19  ;;  %v2871_v60 = vpop.xlane.xlu1 %443  ;;  %v636_v10 = vsel %vm607_vm5, %v603_v32, -inf  ;;  %v619_v62 = vmax.f32 %v617_v58, %v618_v3  ;;  %v625_v57 = vrot.slane %v624_v27, 2 }
 0x18d   :  { %v582_v9 = vsel %vm575_vm3, %v524_v48, %v581_v41  ;;  %v2874_v31 = vpop.xlane.xlu0 %422  ;;  %v611_v41 = vrot.slane %v610_v59, 2  ;;  %v637_v36 = vrot.slane %v636_v10, 4  ;;  %v568_v18 = vrot.slane %v2871_v60, %v2798_v45 }
 0x18e   :  { %v602_v38 = vsel %vm450_vm4, %v582_v9, -inf  ;;  %v540_v7 = vrot.slane %v2874_v31, %v2798_v45  ;;  %v626_v63 = vmax.f32 %v624_v27, %v625_v57 }
 0x18f   :  { %v629_v19 = vsel %vm607_vm5, %v602_v38, -inf  ;;  %v612_v13 = vmax.f32 %v610_v59, %v611_v41 }
 0x190   :  { %v2884_v52 = vpop.xlane.xlu1 %428  ;;  %v630_v48 = vrot.slane %v629_v19, 4  ;;  %v585_v9 = vsel %vm573_vm2, %v544_v26, %v540_v7  ;;  %v638_v7 = vmax.f32 %v636_v10, %v637_v36 }
 0x191   :  { %v548_v53 = vrot.slane %v2884_v52, %v2798_v45  ;;  %v2888_v30 = vpop.xlane.xlu0 %437 }
 0x192   :  { %v631_v43 = vmax.f32 %v629_v19, %v630_v48  ;;  %v620_v48 = vrot.slane %v619_v62, 1 }
 0x193   :  { %v586_v6 = vsel %vm575_vm3, %v548_v53, %v585_v9 }
 0x194   :  { %v604_v38 = vsel %vm450_vm4, %v586_v6, -inf  ;;  %v2894_v32 = vpop.xlane.xlu1 %446  ;;  %v632_v19 = vrot.slane %v631_v43, 2  ;;  %v621_v27 = vmax.f32 %v619_v62, %v620_v48 }
 0x195   :  { %v643_v23 = vsel %vm607_vm5, %v604_v38, -inf  ;;  %v2897_v0 = vpop.xlane.xlu0 %440  ;;  %v572_v6 = vrot.slane %v2894_v32, %v2798_v45  ;;  %v613_v38 = vrot.slane %v612_v13, 1 }
 0x196   :  { %v644_v1 = vrot.slane %v643_v23, 4  ;;  %v564_v26 = vrot.slane %v2897_v0, %v2798_v45 }
 0x198   :  { %v589_v58 = vsel %vm573_vm2, %v568_v18, %v564_v26  ;;  %v2906_v3 = vpop.xlane.xlu1 %434  ;;  %v645_v53 = vmax.f32 %v643_v23, %v644_v1  ;;  %v639_v18 = vrot.slane %v638_v7, 2  ;;  %v560_v26 = vrot.slane %v2888_v30, %v2798_v45 }
 0x199   :  { %v590_v59 = vsel %vm575_vm3, %v572_v6, %v589_v58  ;;  %v556_v41 = vrot.slane %v2906_v3, %v2798_v45  ;;  %v2911_v9 = vpop.xlane.xlu0 %431  ;;  %v633_v23 = vmax.f32 %v631_v43, %v632_v19  ;;  %v2921_v58 = vsub.s32 0, %v2791_v40 }
 0x19a   :  { %v606_v36 = vsel %vm450_vm4, %v590_v59, -inf  ;;  %v552_v10 = vrot.slane %v2911_v9, %v2798_v45  ;;  %v646_v1 = vrot.slane %v645_v53, 2  ;;  %v614_v43 = vmax.f32 %v612_v13, %v613_v38 }
 0x19b   :  { %v657_v6 = vsel %vm607_vm5, %v606_v36, -inf  ;;  %v627_v19 = vrot.slane %v626_v63, 1  ;;  %v634_v62 = vrot.slane %v633_v23, 1 }
 0x19c   :  { %v587_v61 = vsel %vm573_vm2, %v556_v41, %v552_v10  ;;  %v2924_v57 = vpop.xlane.xlu1 %332  ;;  %v658_v59 = vrot.slane %v657_v6, 4  ;;  %v640_v41 = vmax.f32 %v638_v7, %v639_v18 }
 0x19d   :  { %v588_v33 = vsel %vm575_vm3, %v560_v26, %v587_v61  ;;  %v679_v42 = vrot.slane %v2924_v57, %v2798_v45  ;;  %v2929_v4 = vpop.xlane.xlu0 %329  ;;  %v647_v61 = vmax.f32 %v645_v53, %v646_v1  ;;  %v628_v7 = vmax.f32 %v626_v63, %v627_v19 }
 0x19e   :  { %v605_v36 = vsel %vm450_vm4, %v588_v33, -inf  ;;  %v675_v54 = vrot.slane %v2929_v4, %v2798_v45  ;;  %v659_v10 = vmax.f32 %v657_v6, %v658_v59  ;;  %v641_v53 = vrot.slane %v640_v41, 1 }
 0x19f   :  { %v713_v22 = vmax.f32 %v621_v27, %v679_v42  ;;  %v650_v48 = vsel %vm607_vm5, %v605_v36, -inf  ;;  %v648_v6 = vrot.slane %v647_v61, 1 }
 0x1a0   :  { %v2936_v26 = vpop.xlane.xlu1 %338  ;;  %v712_v47 = vmax.f32 %v614_v43, %v675_v54  ;;  %v651_v55 = vrot.slane %v650_v48, 4  ;;  %v660_v39 = vrot.slane %v659_v10, 2  ;;  %v635_v54 = vmax.f32 %v633_v23, %v634_v62 }
 0x1a1   :  { %v687_v13 = vrot.slane %v2936_v26, %v2798_v45  ;;  %v2940_v38 = vpop.xlane.xlu0 %335  ;;  %v2943_v33 = vrot.slane %v713_v22, %v2921_v58  ;;  %v642_v23 = vmax.f32 %v640_v41, %v641_v53 }
 0x1a2   :  { %v683_v42 = vrot.slane %v2940_v38, %v2798_v45  ;;  %v2948_v18 = vrot.slane %v712_v47, %v2921_v58  ;;  %v652_v1 = vmax.f32 %v650_v48, %v651_v55  ;;  %v661_v43 = vmax.f32 %v659_v10, %v660_v39 }
 0x1a3   :  { %860 = vbcast.lane.b32.xlu1 %v2943_v33, 256  ;;  %v715_v47 = vmax.f32 %v635_v54, %v687_v13  ;;  %v649_v48 = vmax.f32 %v647_v61, %v648_v6 }
 0x1a4   :  { %857 = vbcast.lane.b32.xlu0 %v2948_v18, 256  ;;  %v2952_v27 = vpop.xlane.xlu1 %344  ;;  %v714_v59 = vmax.f32 %v628_v7, %v683_v42  ;;  %v653_v22 = vrot.slane %v652_v1, 2  ;;  %v662_v42 = vrot.slane %v661_v43, 1 }
 0x1a5   :  { %v695_v63 = vrot.slane %v2952_v27, %v2798_v45  ;;  %v2956_v19 = vpop.xlane.xlu0 %341  ;;  %v2969_v13 = vrot.slane %v715_v47, %v2921_v58 }
 0x1a6   :  { %v691_v55 = vrot.slane %v2956_v19, %v2798_v45  ;;  %v2961_v36 = vrot.slane %v714_v59, %v2921_v58  ;;  %v654_v62 = vmax.f32 %v652_v1, %v653_v22  ;;  %v663_v6 = vmax.f32 %v661_v43, %v662_v42 }
 0x1a7   :  { %v717_v54 = vmax.f32 %v649_v48, %v695_v63  ;;  %v2449_v22 = vmov 0  }
 0x1a8   :  { %863 = vbcast.lane.b32.xlu1 %v2961_v36, 256  ;;  %v2964_v7 = vpop.xlane.xlu1 %350  ;;  %v716_v39 = vmax.f32 %v642_v23, %v691_v55  ;;  %v655_v10 = vrot.slane %v654_v62, 1  ;;  %2318 = vset.pattern.permute.xlu0 %v2449_v22 }
 0x1a9   :  { %v2966_v16 = vpop.xlane.xlu0 %347  ;;  %v703_v59 = vrot.slane %v2964_v7, %v2798_v45  ;;  %2319 = vset.pattern.permute.xlu1 %v2449_v22  ;;  %v2984_v47 = vrot.slane %v717_v54, %v2921_v58 }
 0x1aa   :  { %v699_v41 = vrot.slane %v2966_v16, %v2798_v45  ;;  %v2976_v61 = vrot.slane %v716_v39, %v2921_v58  ;;  %v656_v53 = vmax.f32 %v654_v62, %v655_v10 }
 0x1ab   :  { %v719_v55 = vmax.f32 %v663_v6, %v703_v59 }
 0x1ac   :  { %869 = vbcast.lane.b32.xlu0 %v2976_v61, 256  ;;  %866 = vbcast.lane.b32.xlu1 %v2969_v13, 256  ;;  %v718_v1 = vmax.f32 %v656_v53, %v699_v41 }
 0x1ad   :  { %v2989_v23 = vrot.slane %v719_v55, %v2921_v58 }
 0x1ae   :  { %v2981_v63 = vrot.slane %v718_v1, %v2921_v58 }
 0x1b0   :  { %875 = vbcast.lane.b32.xlu0 %v2981_v63, 256  ;;  %872 = vbcast.lane.b32.xlu1 %v2984_v47, 256 }
 0x1b4   :  { %878 = vbcast.lane.b32.xlu1 %v2989_v23, 256 }
 0x215   :  { %v861_v43 = vpop.permute.xlu1 %860 }
 0x216   :  { %v858_v62 = vpop.permute.xlu0 %857  ;;  %v892_v10 = vsub.f32 %v2783_v20, %v861_v43  ;;  %v893_v41 = vsub.f32 %v2787_v34, %v861_v43  ;;  %v891_v1 = vsub.f32 %v2800_v46, %v861_v43 }
 0x217   :  { %v888_v48 = vsub.f32 %v2785_v24, %v858_v62  ;;  %v889_v39 = vsub.f32 %v2795_v44, %v858_v62  ;;  %v890_v54 = vsub.f32 %v2804_v49, %v858_v62 }
 0x218   :  { %v920_v53 = vmul.f32 1.442695, %v892_v10  ;;  %v922_v55 = vmul.f32 1.442695, %v893_v41  ;;  %v918_v44 = vmul.f32 1.442695, %v891_v1 }
 0x219   :  { %v912_v42 = vmul.f32 1.442695, %v888_v48  ;;  %v914_v59 = vmul.f32 1.442695, %v889_v39  ;;  %v916_v6 = vmul.f32 1.442695, %v890_v54 }
 0x21a   :  { %v864_v22 = vpop.permute.xlu1 %863 }
 0x21b   :  { %2337 = vpow2.f32 %v912_v42  ;;  %v895_v24 = vsub.f32 %v2793_v11, %v864_v22  ;;  %v894_v20 = vsub.f32 %v2789_v35, %v864_v22  ;;  %v896_v62 = vsub.f32 %v2831_v8, %v864_v22 }
 0x21c   :  { %2339 = vpow2.f32 %v914_v59 }
 0x21d   :  { %2341 = vpow2.f32 %v920_v53  ;;  %v926_v49 = vmul.f32 1.442695, %v895_v24  ;;  %v924_v46 = vmul.f32 1.442695, %v894_v20  ;;  %v928_v35 = vmul.f32 1.442695, %v896_v62 }
 0x21e   :  { %2343 = vpow2.f32 %v916_v6  ;;  %v870_v48 = vpop.permute.xlu0 %869  ;;  %v867_v43 = vpop.permute.xlu1 %866 }
 0x21f   :  { %2345 = vpow2.f32 %v922_v55  ;;  %v901_v34 = vsub.f32 %v2813_v56, %v870_v48  ;;  %v898_v11 = vsub.f32 %v2827_v5, %v867_v43  ;;  %v900_v54 = vsub.f32 %v2819_v21, %v870_v48 }
 0x220   :  { %2347 = vpow2.f32 %v918_v44  ;;  %v899_v56 = vsub.f32 %v2845_v50, %v867_v43  ;;  %v902_v53 = vsub.f32 %v2847_v51, %v870_v48  ;;  %v897_v44 = vsub.f32 %v2859_v15, %v867_v43 }
 0x221   :  { %2349 = vpow2.f32 %v926_v49  ;;  %v938_v42 = vmul.f32 1.442695, %v901_v34  ;;  %v932_v8 = vmul.f32 1.442695, %v898_v11  ;;  %v936_v1 = vmul.f32 1.442695, %v900_v54 }
 0x222   :  { %2351 = vpow2.f32 %v924_v46  ;;  %v873_v6 = vpop.permute.xlu1 %872  ;;  %v934_v55 = vmul.f32 1.442695, %v899_v56  ;;  %v940_v24 = vmul.f32 1.442695, %v902_v53  ;;  %v930_v49 = vmul.f32 1.442695, %v897_v44  ;;  %v876_v43 = vpop.permute.xlu0 %875 }
 0x223   :  { %2353 = vpow2.f32 %v938_v42  ;;  %v904_v21 = vsub.f32 %v2856_v2, %v873_v6  ;;  %v905_v51 = vsub.f32 %v2884_v52, %v873_v6  ;;  %v903_v34 = vsub.f32 %v2874_v31, %v873_v6 }
 0x224   :  { %2355 = vpow2.f32 %v928_v35  ;;  %v907_v35 = vsub.f32 %v2906_v3, %v876_v43  ;;  %v906_v54 = vsub.f32 %v2911_v9, %v876_v43 }
 0x225   :  { %v2338_v39 = vpop.eup %2337  ;;  %2357 = vpow2.f32 %v932_v8  ;;  %v944_v48 = vmul.f32 1.442695, %v904_v21 }
 0x226   :  { %v2340_v10 = vpop.eup %2339  ;;  %985 = vperm.xlu0 %2318, %v2338_v39   ;;  %2359 = vpow2.f32 %v936_v1  ;;  %v879_v62 = vpop.permute.xlu1 %878  ;;  %v946_v39 = vmul.f32 1.442695, %v905_v51  ;;  %v950_v56 = vmul.f32 1.442695, %v907_v35  ;;  %v948_v53 = vmul.f32 1.442695, %v906_v54 }
 0x227   :  { %988 = vperm.xlu1 %2319, %v2340_v10   ;;  %v2342_v59 = vpop.eup %2341  ;;  %2361 = vpow2.f32 %v934_v55  ;;  %v910_v15 = vsub.f32 %v2871_v60, %v879_v62  ;;  %v942_v10 = vmul.f32 1.442695, %v903_v34  ;;  %v909_v52 = vsub.f32 %v2897_v0, %v879_v62 }
 0x228   :  { %v2344_v41 = vpop.eup %2343  ;;  %2363 = vpow2.f32 %v940_v24  ;;  %v911_v8 = vsub.f32 %v2894_v32, %v879_v62  ;;  %v908_v0 = vsub.f32 %v2888_v30, %v876_v43 }
 0x229   :  { %v2346_v22 = vpop.eup %2345  ;;  %2365 = vpow2.f32 %v944_v48  ;;  %v956_v31 = vmul.f32 1.442695, %v910_v15 }
 0x22a   :  { %997 = vperm.xlu0 %2318, %v2342_v59   ;;  %v2348_v5 = vpop.eup %2347  ;;  %2367 = vpow2.f32 %v930_v49  ;;  %v954_v59 = vmul.f32 1.442695, %v909_v52  ;;  %v958_v6 = vmul.f32 1.442695, %v911_v8  ;;  %v952_v9 = vmul.f32 1.442695, %v908_v0 }
 0x22b   :  { %991 = vperm.xlu1 %2319, %v2344_v41   ;;  %v2350_v50 = vpop.eup %2349  ;;  %2369 = vpow2.f32 %v946_v39 }
 0x22c   :  { %v2352_v20 = vpop.eup %2351  ;;  %2371 = vpow2.f32 %v942_v10 }
 0x22d   :  { %v2354_v46 = vpop.eup %2353  ;;  %2373 = vpow2.f32 %v956_v31 }
 0x22e   :  { %1000 = vperm.xlu0 %2318, %v2346_v22   ;;  %v2356_v2 = vpop.eup %2355  ;;  %2375 = vpow2.f32 %v954_v59 }
 0x22f   :  { %994 = vperm.xlu1 %2319, %v2348_v5   ;;  %v2358_v42 = vpop.eup %2357  ;;  %2377 = vpow2.f32 %v950_v56 }
 0x230   :  { %v2360_v11 = vpop.eup %2359  ;;  %2379 = vpow2.f32 %v948_v53 }
 0x231   :  { %v2362_v41 = vpop.eup %2361  ;;  %2381 = vpow2.f32 %v958_v6 }
 0x232   :  { %1006 = vperm.xlu0 %2318, %v2350_v50   ;;  %v2364_v60 = vpop.eup %2363  ;;  %2383 = vpow2.f32 %v952_v9 }
 0x233   :  { %1003 = vperm.xlu1 %2319, %v2352_v20   ;;  %v2366_v3 = vpop.eup %2365 }
 0x234   :  { %v2368_v1 = vpop.eup %2367 }
 0x235   :  { %v2370_v22 = vpop.eup %2369 }
 0x236   :  { %1024 = vperm.xlu0 %2318, %v2354_v46   ;;  %v2372_v5 = vpop.eup %2371 }
 0x237   :  { %1009 = vperm.xlu1 %2319, %v2356_v2   ;;  %v2374_v32 = vpop.eup %2373 }
 0x238   :  { %v2376_v55 = vpop.eup %2375 }
 0x239   :  { %v2378_v30 = vpop.eup %2377 }
 0x23a   :  { %1015 = vperm.xlu0 %2318, %v2358_v42   ;;  %v2380_v21 = vpop.eup %2379 }
 0x23b   :  { %1021 = vperm.xlu1 %2319, %v2360_v11   ;;  %v2382_v24 = vpop.eup %2381 }
 0x23c   :  { %v2384_v44 = vpop.eup %2383 }
 0x23e   :  { %1018 = vperm.xlu0 %2318, %v2362_v41  }
 0x23f   :  { %1027 = vperm.xlu1 %2319, %v2364_v60  }
 0x242   :  { %1033 = vperm.xlu0 %2318, %v2366_v3  }
 0x243   :  { %1012 = vperm.xlu1 %2319, %v2368_v1  }
 0x246   :  { %1036 = vperm.xlu0 %2318, %v2370_v22  }
 0x247   :  { %1030 = vperm.xlu1 %2319, %v2372_v5  }
 0x24a   :  { %1051 = vperm.xlu0 %2318, %v2374_v32  }
 0x24b   :  { %1048 = vperm.xlu1 %2319, %v2376_v55  }
 0x24e   :  { %1042 = vperm.xlu0 %2318, %v2378_v30  }
 0x24f   :  { %1039 = vperm.xlu1 %2319, %v2380_v21  }
 0x252   :  { %1054 = vperm.xlu0 %2318, %v2382_v24  }
 0x253   :  { %1045 = vperm.xlu1 %2319, %v2384_v44  }
 0x256   :  { %740 = vbcast.lane.b32.xlu0 %v2943_v33, 256 }
 0x257   :  { %733 = vbcast.lane.b32.xlu1 %v2948_v18, 256 }
 0x25a   :  { %754 = vbcast.lane.b32.xlu0 %v2969_v13, 256 }
 0x25b   :  { %747 = vbcast.lane.b32.xlu1 %v2961_v36, 256 }
 0x25e   :  { %768 = vbcast.lane.b32.xlu0 %v2984_v47, 256 }
 0x25f   :  { %761 = vbcast.lane.b32.xlu1 %v2976_v61, 256 }
 0x262   :  { %782 = vbcast.lane.b32.xlu0 %v2989_v23, 256 }
 0x263   :  { %775 = vbcast.lane.b32.xlu1 %v2981_v63, 256 }
 0x2a5   :  { %v986_v50 = vpop.permute.xlu0 %985 }
 0x2a6   :  { %v989_v20 = vpop.permute.xlu1 %988  ;;  %v1059_v43 = vrot.slane %v986_v50, %v2798_v45 }
 0x2a7   :  { %v1063_v10 = vrot.slane %v989_v20, %v2798_v45 }
 0x2a9   :  { %v998_v51 = vpop.permute.xlu0 %997  ;;  %v1152_v60 = vsel %vm573_vm2, %v1063_v10, %v1059_v43 }
 0x2aa   :  { %v992_v48 = vpop.permute.xlu1 %991  ;;  %v1075_v42 = vrot.slane %v998_v51, %v2798_v45 }
 0x2ab   :  { %v1067_v11 = vrot.slane %v992_v48, %v2798_v45 }
 0x2ad   :  { %v1001_v49 = vpop.permute.xlu0 %1000  ;;  %v1153_v53 = vsel %vm575_vm3, %v1067_v11, %v1152_v60 }
 0x2ae   :  { %v995_v33 = vpop.permute.xlu1 %994  ;;  %v1079_v31 = vrot.slane %v1001_v49, %v2798_v45  ;;  %v3046_v30 = vsel %vm450_vm4, %v1153_v53, 0.0 }
 0x2af   :  { %v1071_v63 = vrot.slane %v995_v33, %v2798_v45 }
 0x2b1   :  { %v1007_v34 = vpop.permute.xlu0 %1006  ;;  %v1154_v41 = vsel %vm573_vm2, %v1075_v42, %v1071_v63 }
 0x2b2   :  { %v1004_v18 = vpop.permute.xlu1 %1003  ;;  %v1087_v56 = vrot.slane %v1007_v34, %v2798_v45  ;;  %v1155_v9 = vsel %vm575_vm3, %v1079_v31, %v1154_v41 }
 0x2b3   :  { %v1083_v8 = vrot.slane %v1004_v18, %v2798_v45  ;;  %v3053_v50 = vsel %vm450_vm4, %v1155_v9, 0.0 }
 0x2b5   :  { %v1025_v62 = vpop.permute.xlu0 %1024  ;;  %v1156_v21 = vsel %vm573_vm2, %v1087_v56, %v1083_v8 }
 0x2b6   :  { %v1010_v13 = vpop.permute.xlu1 %1009  ;;  %v1111_v20 = vrot.slane %v1025_v62, %v2798_v45 }
 0x2b7   :  { %v1091_v3 = vrot.slane %v1010_v13, %v2798_v45 }
 0x2b9   :  { %v1016_v46 = vpop.permute.xlu0 %1015  ;;  %v1157_v51 = vsel %vm575_vm3, %v1091_v3, %v1156_v21 }
 0x2ba   :  { %v1022_v36 = vpop.permute.xlu1 %1021  ;;  %v1099_v54 = vrot.slane %v1016_v46, %v2798_v45  ;;  %v3066_v46 = vsel %vm450_vm4, %v1157_v51, 0.0 }
 0x2bb   :  { %v1107_v32 = vrot.slane %v1022_v36, %v2798_v45  ;;  %v1191_v36 = vsel %vm607_vm5, %v3053_v50, 0.0  ;;  %v1198_v60 = vsel %vm607_vm5, %v3066_v46, 0.0 }
 0x2bd   :  { %v1019_v2 = vpop.permute.xlu0 %1018  ;;  %v1160_v13 = vsel %vm573_vm2, %v1111_v20, %v1107_v32 }
 0x2be   :  { %v1028_v47 = vpop.permute.xlu1 %1027  ;;  %v1103_v1 = vrot.slane %v1019_v2, %v2798_v45  ;;  %v1184_v2 = vsel %vm607_vm5, %v3046_v30, 0.0 }
 0x2bf   :  { %v1115_v24 = vrot.slane %v1028_v47, %v2798_v45  ;;  %v1185_v41 = vrot.slane %v1184_v2, 4 }
 0x2c1   :  { %v1034_v39 = vpop.permute.xlu0 %1033  ;;  %v1161_v62 = vsel %vm575_vm3, %v1115_v24, %v1160_v13  ;;  %v1186_v32 = vadd.f32 %v1185_v41, %v1184_v2 }
 0x2c2   :  { %v1013_v61 = vpop.permute.xlu1 %1012  ;;  %v1123_v44 = vrot.slane %v1034_v39, %v2798_v45 }
 0x2c3   :  { %v1095_v52 = vrot.slane %v1013_v61, %v2798_v45 }
 0x2c5   :  { %v1037_v15 = vpop.permute.xlu0 %1036  ;;  %v1158_v0 = vsel %vm573_vm2, %v1099_v54, %v1095_v52  ;;  %v3086_v54 = vsel %vm450_vm4, %v1161_v62, 0.0 }
 0x2c6   :  { %v1031_v23 = vpop.permute.xlu1 %1030  ;;  %v1159_v55 = vsel %vm575_vm3, %v1103_v1, %v1158_v0  ;;  %v1127_v48 = vrot.slane %v1037_v15, %v2798_v45 }
 0x2c7   :  { %v1119_v22 = vrot.slane %v1031_v23, %v2798_v45  ;;  %v3060_v33 = vsel %vm450_vm4, %v1159_v55, 0.0  ;;  %v1199_v55 = vrot.slane %v1198_v60, 4 }
 0x2c8   :  { %v1205_v23 = vsel %vm607_vm5, %v3060_v33, 0.0 }
 0x2c9   :  { %v1052_v35 = vpop.permute.xlu0 %1051  ;;  %v1162_v34 = vsel %vm573_vm2, %v1123_v44, %v1119_v22  ;;  %v1206_v0 = vrot.slane %v1205_v23, 4 }
 0x2ca   :  { %v1049_v59 = vpop.permute.xlu1 %1048  ;;  %v1163_v47 = vsel %vm575_vm3, %v1127_v48, %v1162_v34  ;;  %v1147_v39 = vrot.slane %v1052_v35, %v2798_v45  ;;  %v1192_v35 = vrot.slane %v1191_v36, 4  ;;  %v1200_v34 = vadd.f32 %v1199_v55, %v1198_v60 }
 0x2cb   :  { %v1143_v61 = vrot.slane %v1049_v59, %v2798_v45  ;;  %v3092_v56 = vsel %vm450_vm4, %v1163_v47, 0.0 }
 0x2cc   :  { %v1193_v22 = vadd.f32 %v1192_v35, %v1191_v36  ;;  %v1219_v21 = vsel %vm607_vm5, %v3092_v56, 0.0 }
 0x2cd   :  { %v1043_v6 = vpop.permute.xlu0 %1042  ;;  %v1220_v48 = vrot.slane %v1219_v21, 4 }
 0x2ce   :  { %v1040_v5 = vpop.permute.xlu1 %1039  ;;  %v1135_v63 = vrot.slane %v1043_v6, %v2798_v45  ;;  %v1194_v51 = vrot.slane %v1193_v22, 2 }
 0x2cf   :  { %v1131_v43 = vrot.slane %v1040_v5, %v2798_v45  ;;  %v1221_v47 = vadd.f32 %v1220_v48, %v1219_v21 }
 0x2d0   :  { %v1195_v2 = vadd.f32 %v1194_v51, %v1193_v22 }
 0x2d1   :  { %v1055_v49 = vpop.permute.xlu0 %1054  ;;  %v1222_v35 = vrot.slane %v1221_v47, 2 }
 0x2d2   :  { %v1046_v18 = vpop.permute.xlu1 %1045  ;;  %v1151_v10 = vrot.slane %v1055_v49, %v2798_v45  ;;  %v1187_v49 = vrot.slane %v1186_v32, 2 }
 0x2d3   :  { %v1139_v11 = vrot.slane %v1046_v18, %v2798_v45 }
 0x2d5   :  { %v741_v15 = vpop.permute.xlu0 %740 }
 0x2d6   :  { %v793_v52 = vsub.f32 %v2924_v57, %v741_v15  ;;  %v734_v42 = vpop.permute.xlu1 %733  ;;  %v1166_v57 = vsel %vm573_vm2, %v1147_v39, %v1143_v61  ;;  %v1188_v15 = vadd.f32 %v1187_v49, %v1186_v32 }
 0x2d7   :  { %v792_v31 = vsub.f32 %v2929_v4, %v734_v42  ;;  %v1164_v4 = vsel %vm573_vm2, %v1135_v63, %v1131_v43  ;;  %v1167_v53 = vsel %vm575_vm3, %v1151_v10, %v1166_v57 }
 0x2d8   :  { %v802_v59 = vmul.f32 1.442695, %v793_v52  ;;  %v1165_v6 = vsel %vm575_vm3, %v1139_v11, %v1164_v4  ;;  %v3104_v24 = vsel %vm450_vm4, %v1167_v53, 0.0  ;;  %v1189_v60 = vrot.slane %v1188_v15, 1 }
 0x2d9   :  { %v800_v8 = vmul.f32 1.442695, %v792_v31  ;;  %v755_v45 = vpop.permute.xlu0 %754  ;;  %v3110_v20 = vsel %vm450_vm4, %v1165_v6, 0.0  ;;  %v1233_v13 = vsel %vm607_vm5, %v3104_v24, 0.0  ;;  %v1196_v31 = vrot.slane %v1195_v2, 1 }
 0x2da   :  { %2385 = vpow2.f32 %v802_v59  ;;  %v795_v3 = vsub.f32 %v2936_v26, %v755_v45  ;;  %v748_v1 = vpop.permute.xlu1 %747  ;;  %v1212_v26 = vsel %vm607_vm5, %v3086_v54, 0.0  ;;  %v1226_v62 = vsel %vm607_vm5, %v3110_v20, 0.0 }
 0x2db   :  { %2387 = vpow2.f32 %v800_v8  ;;  %v794_v9 = vsub.f32 %v2940_v38, %v748_v1  ;;  %v1207_v38 = vadd.f32 %v1206_v0, %v1205_v23  ;;  %v1213_v18 = vrot.slane %v1212_v26, 4 }
 0x2dc   :  { %v806_v5 = vmul.f32 1.442695, %v795_v3  ;;  %v1234_v39 = vrot.slane %v1233_v13, 4  ;;  %v1201_v23 = vrot.slane %v1200_v34, 2  ;;  %v1227_v43 = vrot.slane %v1226_v62, 4 }
 0x2dd   :  { %v804_v44 = vmul.f32 1.442695, %v794_v9  ;;  %v1208_v36 = vrot.slane %v1207_v38, 2  ;;  %v1214_v63 = vadd.f32 %v1213_v18, %v1212_v26  ;;  %v769_v52 = vpop.permute.xlu0 %768  ;;  %v1197_v6 = vadd.f32 %v1196_v31, %v1195_v2 }
 0x2de   :  { %2389 = vpow2.f32 %v806_v5  ;;  %v762_v42 = vpop.permute.xlu1 %761  ;;  %v1235_v59 = vadd.f32 %v1234_v39, %v1233_v13  ;;  %v1202_v57 = vadd.f32 %v1201_v23, %v1200_v34  ;;  %v1228_v45 = vadd.f32 %v1227_v43, %v1226_v62 }
 0x2df   :  { %2391 = vpow2.f32 %v804_v44  ;;  %v1209_v11 = vadd.f32 %v1208_v36, %v1207_v38  ;;  %v1215_v8 = vrot.slane %v1214_v63, 2  ;;  %v797_v4 = vsub.f32 %v2952_v27, %v769_v52 }
 0x2e0   :  { %v796_v3 = vsub.f32 %v2956_v19, %v762_v42  ;;  %v1223_v9 = vadd.f32 %v1222_v35, %v1221_v47  ;;  %v1236_v22 = vrot.slane %v1235_v59, 2  ;;  %v1190_v32 = vadd.f32 %v1189_v60, %v1188_v15 }
 0x2e1   :  { %v1210_v53 = vrot.slane %v1209_v11, 1  ;;  %v783_v1 = vpop.permute.xlu0 %782  ;;  %v1203_v55 = vrot.slane %v1202_v57, 1  ;;  %v1216_v21 = vadd.f32 %v1215_v8, %v1214_v63  ;;  %v1229_v44 = vrot.slane %v1228_v45, 2 }
 0x2e2   :  { %v776_v5 = vpop.permute.xlu1 %775  ;;  %v810_v26 = vmul.f32 1.442695, %v797_v4  ;;  %v799_v38 = vsub.f32 %v2964_v7, %v783_v1  ;;  %v808_v51 = vmul.f32 1.442695, %v796_v3  ;;  %v1224_v49 = vrot.slane %v1223_v9, 1 }
 0x2e3   :  { %v1211_v27 = vadd.f32 %v1210_v53, %v1209_v11  ;;  %v798_v48 = vsub.f32 %v2966_v16, %v776_v5  ;;  %v1237_v19 = vadd.f32 %v1236_v22, %v1235_v59  ;;  %v1204_v34 = vadd.f32 %v1203_v55, %v1202_v57 }
 0x2e4   :  { %v3116_v61 = vpop.eup %2385  ;;  %v1217_v18 = vrot.slane %v1216_v21, 1  ;;  %v1230_v13 = vadd.f32 %v1229_v44, %v1228_v45  ;;  %2393 = vpow2.f32 %v810_v26  ;;  %v814_v62 = vmul.f32 1.442695, %v799_v38 }
 0x2e5   :  { %v3118_v10 = vpop.eup %2387  ;;  %1295 = vperm.xlu0 %2318, %v3116_v61   ;;  %2395 = vpow2.f32 %v808_v51  ;;  %v812_v36 = vmul.f32 1.442695, %v798_v48  ;;  %v1225_v2 = vadd.f32 %v1224_v49, %v1223_v9  ;;  %v1238_v47 = vrot.slane %v1237_v19, 1 }
 0x2e6   :  { %1290 = vperm.xlu1 %2319, %v3118_v10   ;;  %v1218_v39 = vadd.f32 %v1217_v18, %v1216_v21  ;;  %v1231_v7 = vrot.slane %v1230_v13, 1  ;;  %2397 = vpow2.f32 %v814_v62  ;;  %v1345_v43 = vsub.s32 1, %v2791_v40 }
 0x2e7   :  { %2399 = vpow2.f32 %v812_v36  ;;  %v1239_v16 = vadd.f32 %v1238_v47, %v1237_v19  ;;  %v1339_v31 = vrot.slane %v3046_v30, %v2921_v58  ;;  %v1360_v59 = vrot.slane %v3053_v50, %v2921_v58 }
 0x2e8   :  { %v3122_v41 = vpop.eup %2389  ;;  %v1232_v15 = vadd.f32 %v1231_v7, %v1230_v13  ;;  %v1346_v11 = vrot.slane %v3046_v30, %v1345_v43  ;;  %v1367_v35 = vrot.slane %v3053_v50, %v1345_v43  ;;  %v1388_v60 = vrot.slane %v3066_v46, %v1345_v43 }
 0x2e9   :  { %v3124_v0 = vpop.eup %2391  ;;  %1305 = vperm.xlu0 %2318, %v3122_v41   ;;  %v1381_v57 = vrot.slane %v3066_v46, %v2921_v58  ;;  %v1409_v8 = vrot.slane %v3060_v33, %v1345_v43  ;;  %v1402_v45 = vrot.slane %v3060_v33, %v2921_v58  ;;  %v1430_v4 = vrot.slane %v3086_v54, %v1345_v43 }
 0x2ea   :  { %1300 = vperm.xlu1 %2319, %v3124_v0   ;;  %v1423_v53 = vrot.slane %v3086_v54, %v2921_v58  ;;  %v1451_v3 = vrot.slane %v3092_v56, %v1345_v43  ;;  %v1444_v1 = vrot.slane %v3092_v56, %v2921_v58  ;;  %v1465_v9 = vrot.slane %v3110_v20, %v2921_v58 }
 0x2eb   :  { %v1493_v22 = vrot.slane %v3104_v24, %v1345_v43  ;;  %v1486_v5 = vrot.slane %v3104_v24, %v2921_v58 }
 0x2ed   :  { %1252 = vbcast.lane.b32.xlu0 %v1197_v6, 256  ;;  %v1472_v6 = vrot.slane %v3110_v20, %v1345_v43 }
 0x2ee   :  { %1249 = vbcast.lane.b32.xlu1 %v1190_v32, 256  ;;  %v3132_v23 = vpop.eup %2393  ;;  %v1352_v32 = vsub.s32 2, %v2791_v40 }
 0x2ef   :  { %v3134_v63 = vpop.eup %2395 }
 0x2f0   :  { %v3139_v52 = vpop.eup %2397  ;;  %v1374_v55 = vrot.slane %v3053_v50, %v1352_v32  ;;  %v1353_v21 = vrot.slane %v3046_v30, %v1352_v32  ;;  %v1416_v44 = vrot.slane %v3060_v33, %v1352_v32  ;;  %v1395_v26 = vrot.slane %v3066_v46, %v1352_v32  ;;  %v2329_v30 = vld [vmem:[%s3439_s5] sm:$0xff]   ;;  %v2330_v33 = vld [vmem:[%s3439_s5 + $0x8] sm:$0xff]   ;;  %v2331_v46 = vld [vmem:[%s3439_s5 + $0x10] sm:$0xff]  }
 0x2f1   :  { %1258 = vbcast.lane.b32.xlu0 %v1211_v27, 256  ;;  %v3141_v42 = vpop.eup %2399  ;;  %v1458_v38 = vrot.slane %v3092_v56, %v1352_v32  ;;  %v1437_v58 = vrot.slane %v3086_v54, %v1352_v32  ;;  %v1500_v40 = vrot.slane %v3104_v24, %v1352_v32  ;;  %v1479_v50 = vrot.slane %v3110_v20, %v1352_v32 }
 0x2f2   :  { %1255 = vbcast.lane.b32.xlu1 %v1204_v34, 256  ;;  %2284 = vmatprep.subr.bf16.mxu0 %v2329_v30 }
 0x2f3   :  { %2285 = vmatpush3.bf16.msra.mxu0 %v2329_v30 }
 0x2f4   :  { %2286 = vmatprep.subr.bf16.mxu0 %v2330_v33 }
 0x2f5   :  { %1264 = vbcast.lane.b32.xlu0 %v1225_v2, 256 }
 0x2f6   :  { %1261 = vbcast.lane.b32.xlu1 %v1218_v39, 256 }
 0x2f7   :  { %2287 = vmatpush3.bf16.msra.mxu0 %v2330_v33 }
 0x2f8   :  { %2288 = vmatprep.subr.bf16.mxu0 %v2331_v46 }
 0x2f9   :  { %1270 = vbcast.lane.b32.xlu0 %v1239_v16, 256 }
 0x2fa   :  { %1267 = vbcast.lane.b32.xlu1 %v1232_v15, 256 }
 0x2fb   :  { %2289 = vmatpush3.bf16.msra.mxu0 %v2331_v46 }
 0x2fd   :  { %1315 = vperm.xlu0 %2318, %v3132_v23  }
 0x2fe   :  { %1310 = vperm.xlu1 %2319, %v3134_v63  }
 0x301   :  { %1325 = vperm.xlu0 %2318, %v3139_v52  }
 0x302   :  { %1320 = vperm.xlu1 %2319, %v3141_v42  }
 0x305   :  { %1348 = vbcast.lane.b32.xlu0 %v1346_v11, 256 }
 0x306   :  { %1341 = vbcast.lane.b32.xlu1 %v1339_v31, 256  ;;  %v2334_v31 = vld [vmem:[%s3439_s5 + $0x28] sm:$0xff]  }
 0x309   :  { %1369 = vbcast.lane.b32.xlu0 %v1367_v35, 256  ;;  %v2335_v35 = vld [vmem:[%s3439_s5 + $0x30] sm:$0xff]  }
 0x30a   :  { %1362 = vbcast.lane.b32.xlu1 %v1360_v59, 256  ;;  %v2336_v59 = vld [vmem:[%s3439_s5 + $0x38] sm:$0xff]  }
 0x30d   :  { %1390 = vbcast.lane.b32.xlu0 %v1388_v60, 256 }
 0x30e   :  { %1383 = vbcast.lane.b32.xlu1 %v1381_v57, 256 }
 0x311   :  { %1411 = vbcast.lane.b32.xlu0 %v1409_v8, 256 }
 0x312   :  { %1404 = vbcast.lane.b32.xlu1 %v1402_v45, 256 }
 0x315   :  { %1432 = vbcast.lane.b32.xlu0 %v1430_v4, 256 }
 0x316   :  { %1425 = vbcast.lane.b32.xlu1 %v1423_v53, 256 }
 0x319   :  { %1453 = vbcast.lane.b32.xlu0 %v1451_v3, 256 }
 0x31a   :  { %1446 = vbcast.lane.b32.xlu1 %v1444_v1, 256 }
 0x31d   :  { %1474 = vbcast.lane.b32.xlu0 %v1472_v6, 256 }
 0x31e   :  { %1467 = vbcast.lane.b32.xlu1 %v1465_v9, 256 }
 0x321   :  { %1495 = vbcast.lane.b32.xlu0 %v1493_v22, 256 }
 0x322   :  { %1488 = vbcast.lane.b32.xlu1 %v1486_v5, 256 }
 0x325   :  { %1376 = vbcast.lane.b32.xlu0 %v1374_v55, 256 }
 0x326   :  { %1355 = vbcast.lane.b32.xlu1 %v1353_v21, 256 }
 0x329   :  { %1418 = vbcast.lane.b32.xlu0 %v1416_v44, 256 }
 0x32a   :  { %1397 = vbcast.lane.b32.xlu1 %v1395_v26, 256 }
 0x32d   :  { %1460 = vbcast.lane.b32.xlu0 %v1458_v38, 256 }
 0x32e   :  { %1439 = vbcast.lane.b32.xlu1 %v1437_v58, 256 }
 0x331   :  { %1502 = vbcast.lane.b32.xlu0 %v1500_v40, 256 }
 0x332   :  { %1481 = vbcast.lane.b32.xlu1 %v1479_v50, 256 }
 0x364   :  { %v3187_v54 = vpop.permute.xlu0 %1295 }
 0x365   :  { %v3189_v56 = vpop.permute.xlu1 %1290 }
 0x368   :  { %v3191_v24 = vpop.permute.xlu0 %1305 }
 0x369   :  { %v3193_v20 = vpop.permute.xlu1 %1300 }
 0x36c   :  { %v1253_v27 = vpop.permute.xlu0 %1252 }
 0x36d   :  { %v1281_v51 = vadd.f32 %v3116_v61, %v1253_v27  ;;  %v1250_v48 = vpop.permute.xlu1 %1249 }
 0x36e   :  { %v1280_v49 = vadd.f32 %v3118_v10, %v1250_v48 }
 0x36f   :  { %2401 = vrcp.f32 %v1281_v51 }
 0x370   :  { %2403 = vrcp.f32 %v1280_v49  ;;  %v1259_v19 = vpop.permute.xlu0 %1258 }
 0x371   :  { %v1283_v34 = vadd.f32 %v3122_v41, %v1259_v19  ;;  %v1256_v18 = vpop.permute.xlu1 %1255 }
 0x372   :  { %v1282_v13 = vadd.f32 %v3124_v0, %v1256_v18 }
 0x373   :  { %2405 = vrcp.f32 %v1283_v34  ;;  %v1329_v34 = vmul.f32 %v3187_v54, %v2725_v25 }
 0x374   :  { %2407 = vrcp.f32 %v1282_v13  ;;  %v1265_v62 = vpop.permute.xlu0 %1264  ;;  %v3505_v13 = vld [vmem:[#allocation6_spill] sm:$0xff] }
 0x375   :  { %v1285_v36 = vadd.f32 %v3132_v23, %v1265_v62  ;;  %v1262_v2 = vpop.permute.xlu1 %1261  ;;  %v2332_v23 = vld [vmem:[%s3439_s5 + $0x18] sm:$0xff]  }
 0x376   :  { %v1284_v47 = vadd.f32 %v3134_v63, %v1262_v2  ;;  %2290 = vmatprep.subr.bf16.mxu0 %v2332_v23 }
 0x377   :  { %2409 = vrcp.f32 %v1285_v36  ;;  %2291 = vmatpush3.bf16.msra.mxu0 %v2332_v23  ;;  %v3506_v36 = vld [vmem:[#allocation23_spill] sm:$0xff]  ;;  %v3513_v23 = vld [vmem:[#allocation8_spill] sm:$0xff] }
 0x378   :  { %2411 = vrcp.f32 %v1284_v47  ;;  %v1271_v61 = vpop.permute.xlu0 %1270  ;;  %v1328_v2 = vmul.f32 %v3189_v56, %v3506_v36  ;;  %v3507_v47 = vld [vmem:[#allocation27_spill] sm:$0xff] }
 0x379   :  { %v2402_v10 = vpop.eup %2401  ;;  %v1287_v39 = vadd.f32 %v3139_v52, %v1271_v61  ;;  %v1268_v7 = vpop.permute.xlu1 %1267  ;;  %v2333_v52 = vld [vmem:[%s3439_s5 + $0x20] sm:$0xff]  }
 0x37a   :  { %v2404_v16 = vpop.eup %2403  ;;  %v1286_v41 = vadd.f32 %v3141_v42, %v1268_v7  ;;  %1599 = vperm.xlu0 %2318, %v2402_v10   ;;  %2292 = vmatprep.subr.bf16.mxu0 %v2333_v52  ;;  %v3511_v10 = vld [vmem:[#allocation15_spill] sm:$0xff] }
 0x37b   :  { %2413 = vrcp.f32 %v1287_v39  ;;  %1594 = vperm.xlu1 %2319, %v2404_v16   ;;  %2293 = vmatpush3.bf16.msra.mxu0 %v2333_v52  ;;  %v3514_v52 = vld [vmem:[#allocation12_spill] sm:$0xff] }
 0x37c   :  { %2415 = vrcp.f32 %v1286_v41  ;;  %2294 = vmatprep.subr.bf16.mxu0 %v2334_v31  ;;  %v1316_v60 = vpop.permute.xlu0 %1315  ;;  %v3512_v41 = vld [vmem:[#allocation9_spill] sm:$0xff] }
 0x37d   :  { %v2406_v0 = vpop.eup %2405  ;;  %v3218_v57 = vpop.permute.xlu1 %1310 }
 0x37e   :  { %v2408_v15 = vpop.eup %2407  ;;  %1609 = vperm.xlu0 %2318, %v2406_v0  }
 0x37f   :  { %1604 = vperm.xlu1 %2319, %v2408_v15   ;;  %2295 = vmatpush3.bf16.msra.mxu0 %v2334_v31  ;;  %v3515_v31 = vld [vmem:[#allocation14_spill] sm:$0xff] }
 0x380   :  { %2296 = vmatprep.subr.bf16.mxu0 %v2335_v35  ;;  %v3220_v8 = vpop.permute.xlu0 %1325 }
 0x381   :  { %v2410_v63 = vpop.eup %2409  ;;  %v3222_v45 = vpop.permute.xlu1 %1320 }
 0x382   :  { %v2412_v43 = vpop.eup %2411  ;;  %1619 = vperm.xlu0 %2318, %v2410_v63  }
 0x383   :  { %1614 = vperm.xlu1 %2319, %v2412_v43   ;;  %2297 = vmatpush3.bf16.msra.mxu0 %v2335_v35 }
 0x384   :  { %2298 = vmatprep.subr.bf16.mxu0 %v2336_v59  ;;  %v1349_v4 = vpop.permute.xlu0 %1348 }
 0x385   :  { %v2414_v42 = vpop.eup %2413  ;;  %v1342_v53 = vpop.permute.xlu1 %1341  ;;  %v1505_v48 = vmul.f32 %v1349_v4, %v2599_v29  ;;  %v3516_v4 = vld [vmem:[#allocation11_spill] sm:$0xff] }
 0x386   :  { %v2416_v11 = vpop.eup %2415  ;;  %1629 = vperm.xlu0 %2318, %v2414_v42   ;;  %v1504_v49 = vmul.f32 %v1342_v53, %v2567_v14  ;;  %v3509_v14 = vld [vmem:[#allocation7_spill] sm:$0xff] }
 0x387   :  { %1624 = vperm.xlu1 %2319, %v2416_v11   ;;  %2299 = vmatpush3.bf16.msra.mxu0 %v2336_v59  ;;  %v1529_v56 = vsel %vm327_vm1, %v1505_v48, 0.0 }
 0x388   :  { %v1370_v3 = vpop.permute.xlu0 %1369 }
 0x389   :  { %v1363_v1 = vpop.permute.xlu1 %1362  ;;  %v1508_v27 = vmul.f32 %v1370_v3, %v2564_v12  ;;  %v3237_v12 = vmul.f32 %v3191_v24, %v3507_v47  ;;  %v1528_v24 = vsel %vm327_vm1, %v1504_v49, 0.0  ;;  %v3521_v47 = vld [vmem:[#allocation24_spill] sm:$0xff] }
 0x38a   :  { %v1507_v51 = vmul.f32 %v1363_v1, %v2613_v37  ;;  %v3508_v37 = vld [vmem:[#allocation25_spill] sm:$0xff]  ;;  %v1530_v3 = vadd.f32 %v1529_v56, %v1528_v24 }
 0x38b   :  { %v3241_v29 = vmul.f32 %v3193_v20, %v3508_v37  ;;  %v1534_v61 = vsel %vm327_vm1, %v1508_v27, 0.0 }
 0x38c   :  { %v1391_v6 = vpop.permute.xlu0 %1390  ;;  %v1533_v25 = vsel %vm327_vm1, %v1507_v51, 0.0  ;;  %v3519_v51 = vld [vmem:[#allocation18_spill] sm:$0xff] }
 0x38d   :  { %v1384_v9 = vpop.permute.xlu1 %1383  ;;  %v1511_v19 = vmul.f32 %v1391_v6, %v2595_v28  ;;  %v1535_v11 = vadd.f32 %v1534_v61, %v1533_v25  ;;  %v3523_v25 = vld [vmem:[#allocation21_spill] sm:$0xff] }
 0x38e   :  { %v1510_v18 = vmul.f32 %v1384_v9, %v2574_v17  ;;  %v3510_v17 = vld [vmem:[#allocation10_spill] sm:$0xff]  ;;  %v3517_v9 = vld [vmem:[#allocation17_spill] sm:$0xff] }
 0x38f   :  { %v1539_v16 = vsel %vm327_vm1, %v1511_v19, 0.0 }
 0x390   :  { %v1412_v22 = vpop.permute.xlu0 %1411  ;;  %v1538_v15 = vsel %vm327_vm1, %v1510_v18, 0.0 }
 0x391   :  { %v1405_v5 = vpop.permute.xlu1 %1404  ;;  %v1514_v54 = vmul.f32 %v1412_v22, %v3510_v17 }
 0x392   :  { %v1513_v39 = vmul.f32 %v1405_v5, %v3511_v10  ;;  %v3518_v5 = vld [vmem:[#allocation29_spill] sm:$0xff]  ;;  %v3524_v10 = vld [vmem:[#allocation20_spill] sm:$0xff] }
 0x393   :  { %v1544_v1 = vsel %vm327_vm1, %v1514_v54, 0.0 }
 0x394   :  { %v1433_v32 = vpop.permute.xlu0 %1432  ;;  %v1543_v6 = vsel %vm327_vm1, %v1513_v39, 0.0 }
 0x395   :  { %v1426_v55 = vpop.permute.xlu1 %1425  ;;  %v1517_v20 = vmul.f32 %v1433_v32, %v3512_v41  ;;  %v1333_v32 = vmul.f32 %v1316_v60, %v3518_v5  ;;  %v1545_v49 = vadd.f32 %v1544_v1, %v1543_v6  ;;  %v3525_v41 = vld [vmem:[#allocation22_spill] sm:$0xff] }
 0x396   :  { %v1516_v63 = vmul.f32 %v1426_v55, %v3513_v23  ;;  %v1540_v55 = vadd.f32 %v1539_v16, %v1538_v15 }
 0x398   :  { %v1454_v21 = vpop.permute.xlu0 %1453 }
 0x399   :  { %v1447_v44 = vpop.permute.xlu1 %1446  ;;  %v1520_v35 = vmul.f32 %v1454_v21, %v3515_v31 }
 0x39a   :  { %v1519_v22 = vmul.f32 %v1447_v44, %v3517_v9  ;;  %v3520_v44 = vld [vmem:[#allocation13_spill] sm:$0xff] }
 0x39b   :  { %v1554_v19 = vsel %vm327_vm1, %v1520_v35, 0.0 }
 0x39c   :  { %v1475_v26 = vpop.permute.xlu0 %1474  ;;  %v1553_v36 = vsel %vm327_vm1, %v1519_v22, 0.0 }
 0x39d   :  { %v1468_v38 = vpop.permute.xlu1 %1467  ;;  %v1523_v37 = vmul.f32 %v1475_v26, %v3521_v47  ;;  %v1555_v23 = vadd.f32 %v1554_v19, %v1553_v36  ;;  %v3526_v26 = vld [vmem:[#allocation19_spill] sm:$0xff]  ;;  %v3528_v47 = vld [vmem:[#allocation30_spill] sm:$0xff] }
 0x39e   :  { %v1522_v39 = vmul.f32 %v1468_v38, %v3524_v10 }
 0x3a0   :  { %v1496_v58 = vpop.permute.xlu0 %1495  ;;  %v1558_v31 = vsel %vm327_vm1, %v1522_v39, 0.0 }
 0x3a1   :  { %v1489_v40 = vpop.permute.xlu1 %1488 }
 0x3a2   :  { %v1525_v17 = vmul.f32 %v1489_v40, %v3523_v25  ;;  %v1559_v40 = vsel %vm327_vm1, %v1523_v37, 0.0  ;;  %v1335_v37 = vmul.f32 %v3220_v8, %v3528_v47 }
 0x3a4   :  { %v1377_v50 = vpop.permute.xlu0 %1376 }
 0x3a5   :  { %v1356_v30 = vpop.permute.xlu1 %1355  ;;  %v1509_v62 = vmul.f32 %v1377_v50, %v3505_v13  ;;  %v1549_v50 = vsel %vm327_vm1, %v1517_v20, 0.0 }
 0x3a6   :  { %v1506_v28 = vmul.f32 %v1356_v30, %v3509_v14 }
 0x3a7   :  { %v1536_v43 = vsel %vm327_vm1, %v1509_v62, 0.0 }
 0x3a8   :  { %v1419_v33 = vpop.permute.xlu0 %1418  ;;  %v1531_v59 = vsel %vm327_vm1, %v1506_v28, 0.0  ;;  %v1537_v30 = vadd.f32 %v1536_v43, %v1535_v11  ;;  %v3522_v28 = vld [vmem:[#allocation16_spill] sm:$0xff] }
 0x3a9   :  { %v1398_v46 = vpop.permute.xlu1 %1397  ;;  %v1515_v42 = vmul.f32 %v1419_v33, %v3514_v52  ;;  %v1548_v33 = vsel %vm327_vm1, %v1516_v63, 0.0  ;;  %v1532_v21 = vadd.f32 %v1531_v59, %v1530_v3  ;;  %v1526_v61 = vmul.f32 %v1496_v58, %v3522_v28 }
 0x3aa   :  { %v1512_v53 = vmul.f32 %v1398_v46, %v3516_v4  ;;  %v1550_v54 = vadd.f32 %v1549_v50, %v1548_v33  ;;  %v1569_v56 = vadd.f32 %v1537_v30, %v1329_v34  ;;  %v1563_v34 = vsel %vm327_vm1, %v1525_v17, 0.0  ;;  %v3527_v33 = vld [vmem:[#allocation26_spill] sm:$0xff] }
 0x3ab   :  { %v1546_v27 = vsel %vm327_vm1, %v1515_v42, 0.0  ;;  %v1568_v15 = vadd.f32 %v1532_v21, %v1328_v2  ;;  %v1564_v38 = vsel %vm327_vm1, %v1526_v61, 0.0  ;;  %v1332_v21 = vmul.f32 %v3218_v57, %v3527_v33  ;;  %v3529_v57 = vld [vmem:[#allocation28_spill] sm:$0xff] }
 0x3ac   :  { %v1461_v7 = vpop.permute.xlu0 %1460  ;;  %v1541_v18 = vsel %vm327_vm1, %v1512_v53, 0.0  ;;  %v1565_v22 = vadd.f32 %v1564_v38, %v1563_v34  ;;  %v1334_v17 = vmul.f32 %v3222_v45, %v3529_v57 }
 0x3ad   :  { %v1440_v0 = vpop.permute.xlu1 %1439  ;;  %v1521_v46 = vmul.f32 %v1461_v7, %v3519_v51  ;;  %v1547_v7 = vadd.f32 %v1546_v27, %v1545_v49  ;;  %v1542_v24 = vadd.f32 %v1541_v18, %v1540_v55  ;;  %v1560_v27 = vadd.f32 %v1559_v40, %v1558_v31 }
 0x3ae   :  { %v1518_v62 = vmul.f32 %v1440_v0, %v3520_v44 }
 0x3af   :  { %v1556_v16 = vsel %vm327_vm1, %v1521_v46, 0.0  ;;  %v1571_v2 = vadd.f32 %v1547_v7, %v3237_v12  ;;  %v1570_v9 = vadd.f32 %v1542_v24, %v3241_v29 }
 0x3b0   :  { %v1503_v48 = vpop.permute.xlu0 %1502  ;;  %v1551_v63 = vsel %vm327_vm1, %v1518_v62, 0.0  ;;  %v1557_v35 = vadd.f32 %v1556_v16, %v1555_v23 }
 0x3b1   :  { %v1482_v60 = vpop.permute.xlu1 %1481  ;;  %v1527_v20 = vmul.f32 %v1503_v48, %v3525_v41  ;;  %v1552_v53 = vadd.f32 %v1551_v63, %v1550_v54 }
 0x3b2   :  { %v1524_v43 = vmul.f32 %v1482_v60, %v3526_v26  ;;  %v1573_v19 = vadd.f32 %v1557_v35, %v1333_v32 }
 0x3b3   :  { %v1566_v3 = vsel %vm327_vm1, %v1527_v20, 0.0  ;;  %v1572_v36 = vadd.f32 %v1552_v53, %v1332_v21 }
 0x3b4   :  { %v1561_v5 = vsel %vm327_vm1, %v1524_v43, 0.0  ;;  %v1567_v48 = vadd.f32 %v1566_v3, %v1565_v22 }
 0x3b5   :  { %v1562_v18 = vadd.f32 %v1561_v5, %v1560_v27  ;;  %v2450_v27 = vmov 0.0  }
 0x3b6   :  { %v1575_v32 = vadd.f32 %v1567_v48, %v1335_v37  ;;  %2304 = vmatprep.subr.mxu1 %v2450_v27  ;;  %2306 = vmatprep.mubr.msk.f32.mxu1 %vm2451_vm6, %v2450_v27  ;;  %v1872_v48 = vsel %vm327_vm1, %v3509_v14, 0.0 }
 0x3b7   :  { %v1574_v16 = vadd.f32 %v1562_v18, %v1334_v17 }
 0x3f9   :  { %v1600_v0 = vpop.permute.xlu0 %1599 }
 0x3fa   :  { %v1633_v58 = vmul.f32 %v1600_v0, %v1569_v56  ;;  %v1595_v42 = vpop.permute.xlu1 %1594 }
 0x3fb   :  { %v1632_v11 = vmul.f32 %v1595_v42, %v1568_v15 }
 0x3fc   :  { %v1641_v59 = vsub.f32 %v3505_v13, %v1633_v58 }
 0x3fd   :  { %v1640_v1 = vsub.f32 %v3509_v14, %v1632_v11  ;;  %v1610_v6 = vpop.permute.xlu0 %1609  ;;  %v2229_v11 = vld [vmem:[%s3440_s6] ss:$0 sm:$0xff]  ;;  %v1893_v14 = vsel %vm327_vm1, %v3514_v52, 0.0 }
 0x3fe   :  { %v1649_v55 = vand.u32 2147483647, %v1641_v59  ;;  %v1635_v50 = vmul.f32 %v1610_v6, %v1571_v2  ;;  %v1605_v30 = vpop.permute.xlu1 %1604 }
 0x3ff   :  { %v1648_v46 = vand.u32 2147483647, %v1640_v1  ;;  %v1634_v12 = vmul.f32 %v1605_v30, %v1570_v9 }
 0x400   :  { %v1643_v49 = vsub.f32 %v3514_v52, %v1635_v50 }
 0x401   :  { %v1664_v62 = vcombine.low %v1648_v46, %v1649_v55  ;;  %v1642_v29 = vsub.f32 %v3516_v4, %v1634_v12  ;;  %v1620_v60 = vpop.permute.xlu0 %1619  ;;  %v1879_v12 = vsel %vm327_vm1, %v3505_v13, 0.0 }
 0x402   :  { %v1651_v28 = vand.u32 2147483647, %v1643_v49  ;;  %v1637_v61 = vmul.f32 %v1620_v60, %v1573_v19  ;;  %v1615_v25 = vpop.permute.xlu1 %1614  ;;  %v1886_v19 = vsel %vm327_vm1, %v3516_v4, 0.0  ;;  %v1880_v18 = vrot.slane %v1879_v12, 4 }
 0x403   :  { %v1650_v54 = vand.u32 2147483647, %v1642_v29  ;;  %v1636_v10 = vmul.f32 %v1615_v25, %v1572_v36  ;;  %v1887_v60 = vrot.slane %v1886_v19, 4 }
 0x404   :  { %v1645_v39 = vsub.f32 %v3519_v51, %v1637_v61  ;;  %v1881_v13 = vadd.f32 %v1880_v18, %v1879_v12 }
 0x405   :  { %v1665_v7 = vcombine.low %v1650_v54, %v1651_v28  ;;  %v1644_v56 = vsub.f32 %v3520_v44, %v1636_v10  ;;  %v1630_v24 = vpop.permute.xlu0 %1629  ;;  %v1888_v54 = vadd.f32 %v1887_v60, %v1886_v19 }
 0x406   :  { %v1653_v20 = vand.u32 2147483647, %v1645_v39  ;;  %v1639_v0 = vmul.f32 %v1630_v24, %v1575_v32  ;;  %v1625_v15 = vpop.permute.xlu1 %1624  ;;  %v1894_v24 = vrot.slane %v1893_v14, 4 }
 0x407   :  { %v1652_v8 = vand.u32 2147483647, %v1644_v56  ;;  %v1638_v23 = vmul.f32 %v1625_v15, %v1574_v16  ;;  %v1672_v63 = vpack.c.bf16 %v1665_v7, %v1664_v62  ;;  %v1873_v62 = vrot.slane %v1872_v48, 4 }
 0x408   :  { %v1647_v43 = vsub.f32 %v3525_v41, %v1639_v0  ;;  %v1882_v0 = vrot.slane %v1881_v13, 2  ;;  %v1889_v52 = vrot.slane %v1888_v54, 2 }
 0x409   :  { %v1666_v58 = vcombine.low %v1652_v8, %v1653_v20  ;;  %v1646_v45 = vsub.f32 %v3526_v26, %v1638_v23  ;;  %2300 = vmatprep.mubr.bf16.mxu0 %v1672_v63  ;;  %v1874_v57 = vadd.f32 %v1873_v62, %v1872_v48 }
 0x40a   :  { %v1655_v42 = vand.u32 2147483647, %v1647_v43 }
 0x40b   :  { %v1654_v40 = vand.u32 2147483647, %v1646_v45  ;;  %v1875_v15 = vrot.slane %v1874_v57, 2 }
 0x40d   :  { %v1667_v38 = vcombine.low %v1654_v40, %v1655_v42  ;;  %v1895_v42 = vadd.f32 %v1894_v24, %v1893_v14  ;;  %v1883_v40 = vadd.f32 %v1882_v0, %v1881_v13 }
 0x40f   :  { %v1673_v34 = vpack.c.bf16 %v1667_v38, %v1666_v58  ;;  %v1900_v58 = vsel %vm327_vm1, %v3520_v44, 0.0  ;;  %v1876_v38 = vadd.f32 %v1875_v15, %v1874_v57  ;;  %v1884_v44 = vrot.slane %v1883_v40, 1 }
 0x411   :  { %2301 = vmatmul.mubr.bf16.vlgmr.msra.gmra.mrb[4].mxu0 %v1673_v34  ;;  %v1907_v34 = vsel %vm327_vm1, %v3519_v51, 0.0  ;;  %v1885_v19 = vadd.f32 %v1884_v44, %v1883_v40 }
 0x4e4   :  { %v2302_v31 = vpop.f32.mrb[4].mxu0 }
 0x4e5   :  { %v1788_v35 = vadd.f32 %v2302_v31, %v2229_v11  ;;  %v1779_v59 = vpop.f32.mrb[5].mxu0  ;;  %v1890_v31 = vadd.f32 %v1889_v52, %v1888_v54  ;;  %v3366_v54 = vmul.f32 0.25, %v1885_v19 }
 0x4e6   :  { %v1780_v2 = vadd.f32 %v2229_v11, %v1779_v59  ;;  %v2303_v53 = vpop.f32.mrb[6].mxu0 }
 0x4e7   :  { %v3304_v3 = vmax.f32 %v1788_v35, 0.0  ;;  %v1782_v1 = vpop.f32.mrb[7].mxu0  ;;  %v1791_v55 = vadd.f32 %v2303_v53, %v2229_v11  ;;  %v1901_v35 = vrot.slane %v1900_v58, 4  ;;  %v1896_v53 = vrot.slane %v1895_v42, 2 }
 0x4e8   :  { %v3306_v6 = vmax.f32 %v1780_v2, 0.0  ;;  %v1783_v9 = vadd.f32 %v2229_v11, %v1782_v1  ;;  %v1908_v1 = vrot.slane %v1907_v34, 4 }
 0x4e9   :  { %1802 = vadd.xlane.f32.xlu0 %v3304_v3  ;;  %v1812_v30 = vmul.f32 %v3304_v3, %v3304_v3  ;;  %v3319_v33 = vmax.f32 %v1791_v55, 0.0  ;;  %v1891_v55 = vrot.slane %v1890_v31, 1  ;;  %v1897_v12 = vadd.f32 %v1896_v53, %v1895_v42 }
 0x4ea   :  { %v3309_v22 = vmax.f32 %v1783_v9, 0.0  ;;  %1798 = vadd.xlane.f32.xlu1 %v3306_v6  ;;  %v1810_v50 = vmul.f32 %v3306_v6, %v3306_v6  ;;  %v1909_v48 = vadd.f32 %v1908_v1, %v1907_v34 }
 0x4eb   :  { %v1813_v21 = vmul.f32 %v3319_v33, %v3319_v33  ;;  %v1898_v14 = vrot.slane %v1897_v12, 1 }
 0x4ec   :  { %v1811_v5 = vmul.f32 %v3309_v22, %v3309_v22 }
 0x4ed   :  { %1800 = vadd.xlane.f32.xlu0 %v3309_v22  ;;  %v3377_v15 = vadd.f32 %v1898_v14, %v1897_v12 }
 0x4ee   :  { %1816 = vadd.xlane.f32.xlu1 %v1811_v5  ;;  %v1877_v5 = vrot.slane %v1876_v38, 1 }
 0x4f0   :  { %v1878_v18 = vadd.f32 %v1877_v5, %v1876_v38 }
 0x4f1   :  { %1814 = vadd.xlane.f32.xlu0 %v1810_v50  ;;  %v1902_v50 = vadd.f32 %v1901_v35, %v1900_v58 }
 0x4f2   :  { %1818 = vadd.xlane.f32.xlu1 %v1812_v30 }
 0x4f5   :  { %1804 = vadd.xlane.f32.xlu0 %v3319_v33 }
 0x4f9   :  { %1820 = vadd.xlane.f32.xlu0 %v1813_v21  ;;  %v1914_v21 = vsel %vm327_vm1, %v3526_v26, 0.0 }
 0x4fa   :  { %v1915_v26 = vrot.slane %v1914_v21, 4 }
 0x576   :  { %v1803_v46 = vpop.xlane.xlu0 %1802 }
 0x577   :  { %v1799_v49 = vpop.xlane.xlu1 %1798  ;;  %v3335_v28 = vmul.f32 0.03125, %v1803_v46 }
 0x578   :  { %v3333_v36 = vmul.f32 0.03125, %v1799_v49  ;;  %v2238_v49 = vld [vmem:[%s3441_s7] ss:$0 sm:$0xff] }
 0x579   :  { %v1828_v7 = vmul.f32 %v3335_v28, %v3335_v28 }
 0x57a   :  { %v1801_v29 = vpop.xlane.xlu0 %1800  ;;  %v1826_v4 = vmul.f32 %v3333_v36, %v3333_v36  ;;  %v1834_v62 = vsub.f32 %v3306_v6, %v3333_v36  ;;  %v1921_v6 = vsel %vm327_vm1, %v3525_v41, 0.0 }
 0x57b   :  { %v1807_v47 = vmul.f32 0.03125, %v1801_v29  ;;  %v1817_v37 = vpop.xlane.xlu1 %1816 }
 0x57c   :  { %v1823_v61 = vmul.f32 0.03125, %v1817_v37  ;;  %v1892_v37 = vadd.f32 %v1891_v55, %v1890_v31 }
 0x57d   :  { %v1827_v25 = vmul.f32 %v1807_v47, %v1807_v47  ;;  %v1835_v51 = vsub.f32 %v3309_v22, %v1807_v47  ;;  %v1836_v22 = vsub.f32 %v3304_v3, %v3335_v28  ;;  %v2239_v47 = vld [vmem:[%s3442_s8] ss:$0 sm:$0xff] }
 0x57e   :  { %v1815_v17 = vpop.xlane.xlu0 %1814  ;;  %v3370_v3 = vmul.f32 0.25, %v1892_v37 }
 0x57f   :  { %v1831_v10 = vsub.f32 %v1823_v61, %v1827_v25  ;;  %v1822_v39 = vmul.f32 0.03125, %v1815_v17  ;;  %v1819_v32 = vpop.xlane.xlu1 %1818  ;;  %v1903_v61 = vrot.slane %v1902_v50, 2  ;;  %v1910_v17 = vrot.slane %v1909_v48, 2 }
 0x580   :  { %v1824_v56 = vmul.f32 0.03125, %v1819_v32  ;;  %v3374_v32 = vadd.f32 %v1915_v26, %v1914_v21 }
 0x581   :  { %v1839_v16 = vadd.f32 1e-05, %v1831_v10  ;;  %v1830_v20 = vsub.f32 %v1822_v39, %v1826_v4  ;;  %v3368_v4 = vmul.f32 0.25, %v1878_v18  ;;  %v3372_v28 = vadd.f32 %v1903_v61, %v1902_v50 }
 0x582   :  { %v1832_v8 = vsub.f32 %v1824_v56, %v1828_v7  ;;  %v1805_v23 = vpop.xlane.xlu0 %1804  ;;  %v1922_v56 = vrot.slane %v1921_v6, 4 }
 0x583   :  { %2417 = vrsqrt.f32 %v1839_v16  ;;  %v1838_v63 = vadd.f32 1e-05, %v1830_v20  ;;  %v3343_v43 = vmul.f32 0.03125, %v1805_v23 }
 0x584   :  { %v1840_v45 = vadd.f32 1e-05, %v1832_v8  ;;  %v3379_v8 = vadd.f32 %v1910_v17, %v1909_v48  ;;  %v1923_v21 = vadd.f32 %v1922_v56, %v1921_v6 }
 0x585   :  { %2419 = vrsqrt.f32 %v1838_v63  ;;  %v1829_v59 = vmul.f32 %v3343_v43, %v3343_v43  ;;  %v1837_v63 = vsub.f32 %v3319_v33, %v3343_v43 }
 0x586   :  { %2421 = vrsqrt.f32 %v1840_v45  ;;  %v1821_v11 = vpop.xlane.xlu0 %1820 }
 0x587   :  { %v1825_v2 = vmul.f32 0.03125, %v1821_v11 }
 0x589   :  { %v1833_v9 = vsub.f32 %v1825_v2, %v1829_v59 }
 0x58b   :  { %v1841_v30 = vadd.f32 1e-05, %v1833_v9 }
 0x58d   :  { %v2418_v46 = vpop.eup %2417  ;;  %2423 = vrsqrt.f32 %v1841_v30 }
 0x58e   :  { %v1847_v29 = vmul.f32 %v2418_v46, %v1835_v51 }
 0x58f   :  { %v2420_v60 = vpop.eup %2419 }
 0x590   :  { %v2422_v25 = vpop.eup %2421  ;;  %v1858_v13 = vmul.f32 %v2238_v49, %v1847_v29  ;;  %v1846_v57 = vmul.f32 %v2420_v60, %v1834_v62  ;;  %v1917_v29 = vrot.slane %v3374_v32, 2 }
 0x591   :  { %v1848_v36 = vmul.f32 %v2422_v25, %v1836_v22 }
 0x592   :  { %v1869_v10 = vadd.f32 %v2239_v47, %v1858_v13  ;;  %v1857_v39 = vmul.f32 %v2238_v49, %v1846_v57  ;;  %v1924_v13 = vrot.slane %v1923_v21, 2 }
 0x593   :  { %v1859_v7 = vmul.f32 %v2238_v49, %v1848_v36 }
 0x594   :  { %v1942_v24 = vcombine.high %v1869_v10, %v1869_v10  ;;  %v1963_v16 = vsel %vm327_vm1, %v1869_v10, 0.0  ;;  %v1868_v20 = vadd.f32 %v2239_v47, %v1857_v39  ;;  %v1905_v39 = vrot.slane %v3372_v28, 1 }
 0x595   :  { %v1964_v41 = vrot.slane %v1963_v16, 4  ;;  %v1870_v0 = vadd.f32 %v2239_v47, %v1859_v7 }
 0x596   :  { %v1941_v23 = vcombine.high %v1868_v20, %v1868_v20  ;;  %v1949_v52 = vsel %vm327_vm1, %v1868_v20, 0.0  ;;  %v1970_v58 = vsel %vm327_vm1, %v1942_v24, 0.0 }
 0x597   :  { %v2424_v45 = vpop.eup %2423  ;;  %v1965_v42 = vadd.f32 %v1964_v41, %v1963_v16  ;;  %v1950_v40 = vrot.slane %v1949_v52, 4  ;;  %v1943_v38 = vcombine.high %v1870_v0, %v1870_v0  ;;  %v1977_v34 = vsel %vm327_vm1, %v1870_v0, 0.0 }
 0x598   :  { %v1956_v11 = vsel %vm327_vm1, %v1941_v23, 0.0  ;;  %v1978_v31 = vrot.slane %v1977_v34, 4  ;;  %v1849_v35 = vmul.f32 %v2424_v45, %v1837_v63  ;;  %v1971_v59 = vrot.slane %v1970_v58, 4 }
 0x599   :  { %v1966_v2 = vrot.slane %v1965_v42, 2  ;;  %v1951_v53 = vadd.f32 %v1950_v40, %v1949_v52  ;;  %v1957_v1 = vrot.slane %v1956_v11, 4  ;;  %v1984_v9 = vsel %vm327_vm1, %v1943_v38, 0.0 }
 0x59a   :  { %v1860_v44 = vmul.f32 %v2238_v49, %v1849_v35  ;;  %v1972_v33 = vadd.f32 %v1971_v59, %v1970_v58  ;;  %v1979_v43 = vadd.f32 %v1978_v31, %v1977_v34  ;;  %v1985_v5 = vrot.slane %v1984_v9, 4 }
 0x59b   :  { %v1952_v55 = vrot.slane %v1951_v53, 2  ;;  %v1958_v50 = vadd.f32 %v1957_v1, %v1956_v11  ;;  %v1967_v30 = vadd.f32 %v1966_v2, %v1965_v42  ;;  %v1918_v16 = vadd.f32 %v1917_v29, %v3374_v32 }
 0x59c   :  { %v1871_v51 = vadd.f32 %v2239_v47, %v1860_v44  ;;  %v1973_v46 = vrot.slane %v1972_v33, 2  ;;  %v1980_v12 = vrot.slane %v1979_v43, 2  ;;  %v1986_v48 = vadd.f32 %v1985_v5, %v1984_v9 }
 0x59d   :  { %v1953_v19 = vadd.f32 %v1952_v55, %v1951_v53  ;;  %v1959_v18 = vrot.slane %v1958_v50, 2  ;;  %v1968_v62 = vrot.slane %v1967_v30, 1  ;;  %v1912_v23 = vrot.slane %v3379_v8, 1 }
 0x59e   :  { %v1944_v60 = vcombine.high %v1871_v51, %v1871_v51  ;;  %v1974_v37 = vadd.f32 %v1973_v46, %v1972_v33  ;;  %v1981_v61 = vadd.f32 %v1980_v12, %v1979_v43  ;;  %v1987_v49 = vrot.slane %v1986_v48, 2 }
 0x59f   :  { %v1954_v26 = vrot.slane %v1953_v19, 1  ;;  %v1960_v22 = vadd.f32 %v1959_v18, %v1958_v50  ;;  %v1991_v25 = vsel %vm327_vm1, %v1871_v51, 0.0  ;;  %v1969_v7 = vadd.f32 %v1968_v62, %v1967_v30 }
 0x5a0   :  { %v1975_v57 = vrot.slane %v1974_v37, 1  ;;  %v1982_v14 = vrot.slane %v1981_v61, 1  ;;  %v1988_v47 = vadd.f32 %v1987_v49, %v1986_v48  ;;  %v1992_v17 = vrot.slane %v1991_v25, 4 }
 0x5a1   :  { %v1955_v6 = vadd.f32 %v1954_v26, %v1953_v19  ;;  %v1961_v36 = vrot.slane %v1960_v22, 1  ;;  %v1998_v10 = vsel %vm327_vm1, %v1944_v60, 0.0  ;;  %v1925_v58 = vadd.f32 %v1924_v13, %v1923_v21  ;;  %v2014_v26 = vld [vmem:[%s3444_s10] sm:$0x1]  ;;  %s2452_s10 = smov [#allocation3]  }
 0x5a2   :  { %v1989_v56 = vrot.slane %v1988_v47, 1  ;;  %v1993_v24 = vadd.f32 %v1992_v17, %v1991_v25  ;;  %v1976_v41 = vadd.f32 %v1975_v57, %v1974_v37  ;;  %v1999_v0 = vrot.slane %v1998_v10, 4  ;;  %v2013_v13 = vld [vmem:[%s3443_s9] sm:$0x1]  ;;  %s2203_s3 = sshll.u32 %s2452_s10, 4  ;;  %s2204_s3 = int_to_ptr.vmem [resolvable:$true] %s2203_s3 }
 0x5a3   :  { %v1962_v20 = vadd.f32 %v1961_v36, %v1960_v22  ;;  %v1983_v52 = vadd.f32 %v1982_v14, %v1981_v61  ;;  %v2114_v45 = vsel %vm573_vm2, %v3366_v54, %v3368_v4  ;;  %v2005_v38 = vmul.f32 0.25, %v1955_v6  ;;  %s2425_s4 = scalar_lea.vmem %s2204_s3, 16  ;;  %s2429_s23 = scalar_lea.vmem %s2204_s3, 32 }
 0x5a4   :  { %v1994_v63 = vrot.slane %v1993_v24, 2  ;;  %v1990_v42 = vadd.f32 %v1989_v56, %v1988_v47  ;;  %v2000_v40 = vadd.f32 %v1999_v0, %v1998_v10  ;;  %v2007_v31 = vmul.f32 0.25, %v1969_v7  ;;  %p2426_p0 = scmp.ne.s32.totalorder %s2204_s3, %s2425_s4  ;;  %p2430_p1 = scmp.lt.s32.totalorder %s2204_s3, %s2204_s3 }
 0x5a5   :  { %v2006_v34 = vmul.f32 0.25, %v1962_v20  ;;  %v1919_v35 = vrot.slane %v1918_v16, 1  ;;  %v1932_v32 = vmul.f32 0.25, %v3377_v15  ;;  %v2008_v2 = vmul.f32 0.25, %v1976_v41  ;;  %p2431_p2 = scmp.lt.s32.totalorder %s2429_s23, %s2425_s4 }
 0x5a6   :  { %v1995_v11 = vadd.f32 %v1994_v63, %v1993_v24  ;;  %v2001_v59 = vrot.slane %v2000_v40, 2  ;;  %v1913_v1 = vadd.f32 %v1912_v23, %v3379_v8  ;;  %v2009_v44 = vmul.f32 0.25, %v1983_v52 }
 0x5a7   :  { %v2023_v53 = vsel %vm573_vm2, %v2006_v34, %v2005_v38  ;;  %v1906_v54 = vadd.f32 %v1905_v39, %v3372_v28  ;;  %v2010_v43 = vmul.f32 0.25, %v1990_v42  ;;  %v1926_v55 = vrot.slane %v1925_v58, 1  ;;  %p2432_p3 = por %p2431_p2, %p2430_p1 }
 0x5a8   :  { %v1996_v9 = vrot.slane %v1995_v11, 1  ;;  %v2024_v33 = vsel %vm575_vm3, %v2007_v31, %v2023_v53  ;;  %v2002_v4 = vadd.f32 %v2001_v59, %v2000_v40  ;;  %v1920_v30 = vadd.f32 %v1919_v35, %v1918_v16 }
 0x5a9   :  { %v2026_v5 = vsel %vm2025_vm7, %v2008_v2, %v2024_v33  ;;  %v2115_v21 = vsel %vm575_vm3, %v3370_v3, %v2114_v45  ;;  %v1934_v46 = vmul.f32 0.25, %v1913_v1  ;;  %v1933_v28 = vmul.f32 0.25, %v1906_v54  ;;  %p2433_p4 = pnand %p2432_p3, %p2426_p0 }
 0x5aa   :  { %v1997_v50 = vadd.f32 %v1996_v9, %v1995_v11  ;;  %v2028_v15 = vsel %vm2027_vm8, %v2009_v44, %v2026_v5  ;;  %v2003_v51 = vrot.slane %v2002_v4, 1  ;;  %v2116_v12 = vsel %vm2025_vm7, %v1932_v32, %v2115_v21 }
 0x5ab   :  { %v2030_v8 = vsel %vm2029_vm9, %v2010_v43, %v2028_v15  ;;  %v1927_v18 = vadd.f32 %v1926_v55, %v1925_v58  ;;  %v1935_v29 = vmul.f32 0.25, %v1920_v30  ;;  %v2117_v60 = vsel %vm2027_vm8, %v1933_v28, %v2116_v12 }
 0x5ac   :  { %v2011_v48 = vmul.f32 0.25, %v1997_v50  ;;  %v2004_v19 = vadd.f32 %v2003_v51, %v2002_v4  ;;  %v2118_v61 = vsel %vm2029_vm9, %v1934_v46, %v2117_v60  ;;  %v2193_v17 = vstv %s3445_s11 }
 0x5ad   :  { %v1936_v49 = vmul.f32 0.25, %v1927_v18  ;;  %v2119_v22 = vsel %vm2031_vm10, %v1935_v29, %v2118_v61 }
 0x5ae   :  { %v2032_v62 = vsel %vm2031_vm10, %v2011_v48, %v2030_v8  ;;  %v2012_v37 = vmul.f32 0.25, %v2004_v19 }
 0x5af   :  { %v2120_v25 = vsel %vm2033_vm11, %v1936_v49, %v2119_v22 }
 0x5b0   :  { %v2034_v3 = vsel %vm2033_vm11, %v2012_v37, %v2032_v62 }
 0x5b1   :  { %2305 = vmatpush3.xpose.msra.mxu1 %v2034_v3 }
 0x5b2   :  { %2309 = vmatprep.subr.mxu1 %v2450_v27 }
 0x5b4   :  { %2307 = vmatmul.mubr.f32.vlgmr.msra.gmra.mrb[12].mxu1 %v2014_v26 }
 0x5b5   :  { %2310 = vmatpush3.xpose.msra.mxu1 %v2120_v25  ;;  %2311 = vmatprep.mubr.msk.f32.mxu1 %vm2451_vm6, %v2450_v27 }
 0x5b8   :  { %2312 = vmatmul.mubr.f32.vlgmr.msra.gmra.mrb[14].mxu1 %v2013_v13 }
 0x687   :  { %v2102_v57 = vpop.f32.mrb[12].mxu1 }
 0x688   :  { %v2308_v14 = vpop.f32.mrb[13].mxu1 }
 0x68b   :  { %v2188_v47 = vpop.f32.mrb[14].mxu1 }
 0x68c   :  { %v2189_v6 = vadd.f32 %v2188_v47, %v2102_v57  ;;  %v2313_v36 = vpop.f32.mrb[15].mxu1 }
 0x68e   :  { %v2194_v10 = vadd.f32 %v2193_v17, %v2189_v6 }
 0x690   :  { %2196 = vst.msk [vmem:[#allocation3] sm:$0x1] %vm2195_vm12, %v2194_v10 }
 0x691   :  { %2436 = shalt.err (!%p2433_p4)
}
 0x692   :  { %s2437_s11 = scalar_lea.hbm %s3446_s12, 16 }
 0x693   :  { %p2438_p5 = scmp.ne.s32.totalorder %s3446_s12, %s2437_s11  ;;  %p2441_p6 = scmp.lt.u32.totalorder %s2437_s11, %s3446_s12 }
 0x695   :  { %p2443_p7 = pnand %p2441_p6, %p2438_p5 }
 0x697   :  { %2446 = shalt.err (!%p2443_p7)
}
 0x698   :  { %2206 = dma.vmem_to_hbm [thread:$0]  %s2204_s3, 16, %s3446_s12, [#allocation4]  }
 0x699   :  { %2447 = dma.done.wait [#allocation4], 16  }
 0x69a   :  { %2448 = vsyncadd [#allocation4], 4294967280 }
 0x69b   :  { %2210 = vsyncpa [#allocation4], 1 }

</bundles_post_ra>
